<compile_context>
chip_gen: v6e
topology: v6e:2x2x1
jax: 0.10.0
libtpu: 0.0.40
codegen_flags: <defaults>
</compile_context>

<pallas_src>
import functools

import jax
import jax.numpy as jnp
from jax import lax
from jax.experimental import pallas as pl
from jax.experimental.pallas import tpu as pltpu


def _round_up(n, m):
    return ((n + m - 1) // m) * m


# ----------------------------------------------------------------------------- kernel
def _fused_encoder_kernel(nhead, q_tile, seg,
                          x_ref, wqkv_ref, wo_ref, w1_ref, w2_ref, vec_ref,
                          out_ref, attn_ref):
    l = pl.program_id(1)
    Bb, S, E = x_ref.shape
    s_pad = attn_ref.shape[2]
    M = Bb * S
    dh = E // nhead
    G = Bb * nhead                       # collapsed (head, batch) groups
    inv_nhead = 1.0 / float(nhead)

    def vec(name):
        off, w = seg[name]
        return vec_ref[:, off:off + w]   # (1, w) f32 row (broadcasts over rows)

    # ---- layer 0: seed the resident residual stream / zero the attn output ----
    @pl.when(l == 0)
    def _():
        out_ref[...] = x_ref[...]
        attn_ref[...] = jnp.zeros_like(attn_ref)

    x = out_ref[...].reshape(M, E)       # residual stream, resident across layers
    x_bf = x.astype(jnp.bfloat16)

    # ---- fused QKV projection (1/sqrt(dh) already folded into the Q columns) --
    qkv = jnp.dot(x_bf, wqkv_ref[...],
                  preferred_element_type=jnp.float32) + vec('bqkv')     # (M, 3E)

    # ---- head split: one reshape + one lane-aware leading-dim swap -------------
    qkv = qkv.reshape(M, 3 * nhead, dh)              # lanes -> (part*nhead+h, dh)
    qkv = pltpu.einshape("mhd->hmd", qkv)            # (3*nhead, M, dh)
    q = qkv[0:nhead].reshape(G, S, dh).astype(jnp.bfloat16)      # g = h*Bb + b
    k = qkv[nhead:2 * nhead].reshape(G, S, dh).astype(jnp.bfloat16)
    v = qkv[2 * nhead:3 * nhead].reshape(G, S, dh).astype(jnp.bfloat16)

    # ---- attention, tiled over query rows (bounds live softmax intermediates) --
    n_qt = S // q_tile
    ctx_tiles = []
    for t in range(n_qt):
        q0 = t * q_tile
        qt = q[:, q0:q0 + q_tile, :]                                   # (G, tq, dh)
        sc = jnp.einsum('gqd,gkd->gqk', qt, k,
                        preferred_element_type=jnp.float32)            # (G, tq, S)
        sc = sc - jnp.max(sc, axis=-1, keepdims=True)
        ex = jnp.exp(sc)
        p = ex / jnp.sum(ex, axis=-1, keepdims=True)                   # exact softmax

        # head-averaged map accumulated straight into the resident output block
        a_tile = jnp.mean(p.reshape(nhead, Bb, q_tile, S), axis=0)     # (Bb, tq, S)
        cur = attn_ref[:, q0:q0 + q_tile, 0:S]
        attn_ref[:, q0:q0 + q_tile, 0:S] = cur + a_tile

        ctx = jnp.einsum('gqk,gkd->gqd', p.astype(jnp.bfloat16), v,
                         preferred_element_type=jnp.float32)           # (G, tq, dh)
        ctx = pltpu.einshape("hmd->mhd", ctx.reshape(nhead, Bb * q_tile, dh))
        ctx_tiles.append(ctx.reshape(Bb, q_tile, E))
    ctx = ctx_tiles[0] if n_qt == 1 else jnp.concatenate(ctx_tiles, axis=1)
    ctx = ctx.reshape(M, E)

    sa = jnp.dot(ctx.astype(jnp.bfloat16), wo_ref[...],
                 preferred_element_type=jnp.float32) + vec('bo')       # (M, E)

    # ---- residual + LayerNorm, FFN, residual + LayerNorm (all f32) ------------
    def _ln(h, g, b):
        mu = jnp.mean(h, axis=-1, keepdims=True)
        var = jnp.mean((h - mu) ** 2, axis=-1, keepdims=True)
        return (h - mu) * lax.rsqrt(var + 1e-5) * g + b

    x1 = _ln(x + sa, vec('g1'), vec('be1'))
    h1 = jnp.maximum(
        jnp.dot(x1.astype(jnp.bfloat16), w1_ref[...],
                preferred_element_type=jnp.float32) + vec('b1'), 0.0)
    ff = jnp.dot(h1.astype(jnp.bfloat16), w2_ref[...],
                 preferred_element_type=jnp.float32) + vec('b2')
    x2 = _ln(x1 + ff, vec('g2'), vec('be2'))

    out_ref[...] = x2.reshape(Bb, S, E).astype(out_ref.dtype)   # keep stream resident


# --------------------------------------------------------------------------- sizing
def _vmem_capacity_bytes():
    try:
        cap = getattr(pltpu.get_tpu_info(), "vmem_capacity_bytes", None)
        if cap:
            return int(cap)
    except Exception:
        pass
    return 64 * 1024 * 1024          # conservative (v7x per-TC physical VMEM)


def _choose_b_block(B, S, target_rows, min_parallel):
    """Largest batch block (rows = b_blk*S) within target_rows; keep >= min_parallel
    blocks so both TensorCores get work when the problem is big enough."""
    if B <= 1:
        return 1
    cap = max(1, target_rows // max(S, 1))
    if min_parallel > 1:
        cap = min(cap, max(1, B // min_parallel))
    b_blk = min(cap, B)
    while B % b_blk:
        b_blk -= 1
    return max(b_blk, 1)


def _choose_q_tile(S, nhead, b_blk, budget_bytes=8 << 20):
    """Largest divisor of S keeping the live (G, tq, S) score/prob set bounded."""
    per_row = b_blk * nhead * S * 14     # s, e, p (f32) + p (bf16) per query row
    cap = max(8, budget_bytes // max(per_row, 1))
    if S <= cap:
        return S
    t = int(cap)
    while S % t:
        t -= 1
    return max(t, 1)


# --------------------------------------------------------------------- param packing
def stack_layer_params(layer_params, nhead):
    """Stack per-layer params along a leading layer axis; fold the Q scale; cast
    matmul weights to bf16; pack all small vectors into one lane-aligned slab."""
    E = layer_params[0]['wqkv_t'].shape[0]
    FF = layer_params[0]['w1_t'].shape[1]
    dh = E // nhead
    scale = 1.0 / (dh ** 0.5)

    def stack(name):
        return jnp.stack([p[name] for p in layer_params], axis=0)

    wqkv = stack('wqkv_t')                             # (L, E, 3E)
    wqkv = wqkv.at[:, :, 0:E].multiply(scale)          # fold 1/sqrt(dh) into Q
    bqkv = stack('bqkv')                               # (L, 1, 3E)
    bqkv = bqkv.at[:, :, 0:E].multiply(scale)

    pieces = {'bqkv': bqkv, 'bo': stack('bo'), 'b1': stack('b1'), 'b2': stack('b2'),
              'g1': stack('g1'), 'be1': stack('be1'), 'g2': stack('g2'),
              'be2': stack('be2')}
    seg_specs = [('bqkv', 3 * E), ('bo', E), ('b1', FF), ('b2', E),
                 ('g1', E), ('be1', E), ('g2', E), ('be2', E)]
    seg, cols, off = {}, [], 0
    L = wqkv.shape[0]
    for name, w in seg_specs:
        wpad = _round_up(w, 128)                       # lane-aligned segment starts
        seg[name] = (off, w)
        arr = pieces[name].astype(jnp.float32)         # (L, 1, w)
        if wpad > w:
            arr = jnp.concatenate(
                [arr, jnp.zeros((L, 1, wpad - w), jnp.float32)], axis=-1)
        cols.append(arr)
        off += wpad
    vecs = jnp.concatenate(cols, axis=-1)              # (L, 1, Npacked)

    stacked = dict(
        wqkv=wqkv.astype(jnp.bfloat16),
        wo=stack('wo_t').astype(jnp.bfloat16),
        w1=stack('w1_t').astype(jnp.bfloat16),
        w2=stack('w2_t').astype(jnp.bfloat16),
        vecs=vecs,
    )
    return stacked, seg


# ------------------------------------------------------------------------ entry point
def fused_encoder_call(x, P, seg, nhead):
    """x: (B, S, E) f32 -> (out (B, S, E), attn (B, S, S)). All layers fused."""
    B, S, E = x.shape
    L = P['wqkv'].shape[0]
    FF = P['w1'].shape[-1]
    Npacked = P['vecs'].shape[-1]

    vmem_cap = _vmem_capacity_bytes()
    target_rows = 512 if vmem_cap >= 96 * 1024 * 1024 else 256
    # Gate the TC split: tiny problems would just stream the weight stack twice.
    min_parallel = 2 if B * S >= 512 else 1
    b_blk = _choose_b_block(B, S, target_rows, min_parallel)
    nb = B // b_blk
    s_pad = _round_up(S, 128)                          # lane-dense attention output
    q_tile = _choose_q_tile(S, nhead, b_blk)

    x_map = lambda b, l: (b, 0, 0)
    w_map = lambda b, l: (l, 0, 0)
    in_specs = [
        pl.BlockSpec((b_blk, S, E), x_map),
        pl.BlockSpec((pl.Squeezed(), E, 3 * E), w_map),
        pl.BlockSpec((pl.Squeezed(), E, E), w_map),
        pl.BlockSpec((pl.Squeezed(), E, FF), w_map),
        pl.BlockSpec((pl.Squeezed(), FF, E), w_map),
        pl.BlockSpec((pl.Squeezed(), 1, Npacked), w_map),
    ]
    out_specs = (pl.BlockSpec((b_blk, S, E), x_map),
                 pl.BlockSpec((b_blk, S, s_pad), x_map))

    # Advisory cost estimate for XLA's scheduler.
    flops = L * (2 * B * S * (3 * E * E + E * E + 2 * E * FF) + 4 * B * S * S * E)
    transcendentals = L * B * nhead * S * S
    w_bytes_layer = (3 * E * E + E * E + 2 * E * FF) * 2 + Npacked * 4
    bytes_accessed = B * S * E * 4 * 2 + B * S * s_pad * 4 + L * w_bytes_layer

    # Generation-aware scoped-VMEM budget (~85% of physical per-core VMEM).
    vmem_limit = int(max(32 * 1024 * 1024, int(0.85 * vmem_cap)))

    kernel = functools.partial(_fused_encoder_kernel, nhead, q_tile, seg)
    out, attn_padded = pl.pallas_call(
        kernel,
        out_shape=(jax.ShapeDtypeStruct((B, S, E), jnp.float32),
                   jax.ShapeDtypeStruct((B, S, s_pad), jnp.float32)),
        grid=(nb, L),
        in_specs=in_specs,
        out_specs=out_specs,
        compiler_params=pltpu.CompilerParams(
            dimension_semantics=("parallel", "arbitrary"),
            vmem_limit_bytes=vmem_limit),
        cost_estimate=pl.CostEstimate(flops=int(flops),
                                      transcendentals=int(transcendentals),
                                      bytes_accessed=int(bytes_accessed)),
    )(x, P['wqkv'], P['wo'], P['w1'], P['w2'], P['vecs'])
    return out, attn_padded[:, :, :S]


def transformer_encoder_forward(src, layer_params, nhead):
    """src: (S, B, E) seq-first, like the PyTorch module.
    Returns (output (S, B, E), attn_output (B, S, S))."""
    x = jnp.transpose(src, (1, 0, 2))                  # -> (B, S, E) kernel layout
    stacked, seg = stack_layer_params(layer_params, nhead)
    out, attn_output = fused_encoder_call(x, stacked, seg, nhead)
    # norm is None in this configuration -> no final LayerNorm
    return jnp.transpose(out, (1, 0, 2)), attn_output


# ----------------------------------------------------------------------------- params
def init_layer_params(key, d_model, dim_ff):
    ks = jax.random.split(key, 8)
    s = 0.1
    wqkv = jax.random.normal(ks[0], (3 * d_model, d_model), jnp.float32) * s
    bqkv = jax.random.normal(ks[1], (3 * d_model,), jnp.float32) * s
    wo = jax.random.normal(ks[2], (d_model, d_model), jnp.float32) * s
    bo = jax.random.normal(ks[3], (d_model,), jnp.float32) * s
    w1 = jax.random.normal(ks[4], (dim_ff, d_model), jnp.float32) * s
    b1 = jax.random.normal(ks[5], (dim_ff,), jnp.float32) * s
    w2 = jax.random.normal(ks[6], (d_model, dim_ff), jnp.float32) * s
    b2 = jax.random.normal(ks[7], (d_model,), jnp.float32) * s
    # Pre-transpose weights so the kernel does plain x @ W; vectors as (1, N) rows.
    return dict(
        wqkv_t=wqkv.T, bqkv=bqkv[None, :],
        wo_t=wo.T, bo=bo[None, :],
        w1_t=w1.T, b1=b1[None, :],
        w2_t=w2.T, b2=b2[None, :],
        g1=jnp.ones((1, d_model), jnp.float32), be1=jnp.zeros((1, d_model), jnp.float32),
        g2=jnp.ones((1, d_model), jnp.float32), be2=jnp.zeros((1, d_model), jnp.float32),
    )


if __name__ == "__main__":
    S, B, E = 8, 2, 32          # seq, batch, d_model
    NHEAD, FF, NLAYERS = 4, 64, 2

    key = jax.random.PRNGKey(0)
    k_src, k_par = jax.random.split(key)
    src = jax.random.normal(k_src, (S, B, E), jnp.float32)

    # _get_clones deep-copies one encoder_layer -> all layers share identical init.
    layer_p = init_layer_params(k_par, E, FF)
    layer_params = [layer_p] * NLAYERS

    out, attn = transformer_encoder_forward(src, layer_params, NHEAD)
    out, attn = jax.block_until_ready((out, attn))

    assert out.shape == (S, B, E), out.shape
    assert attn.shape == (B, S, S), attn.shape
    assert bool(jnp.all(jnp.isfinite(out))) and bool(jnp.all(jnp.isfinite(attn)))
    print("KERNEL_OK")
</pallas_src>

<mosaic_0001>
module attributes {stable_mosaic.version = 11 : i64} {
  func.func @_fused_encoder_kernel(%arg0: i32, %arg1: i32, %arg2: memref<2x8x32xf32, #tpu.memory_space<vmem>>, %arg3: memref<1x32x96xbf16, #tpu.memory_space<vmem>>, %arg4: memref<1x32x32xbf16, #tpu.memory_space<vmem>>, %arg5: memref<1x32x64xbf16, #tpu.memory_space<vmem>>, %arg6: memref<1x64x32xbf16, #tpu.memory_space<vmem>>, %arg7: memref<1x1x1024xf32, #tpu.memory_space<vmem>>, %arg8: memref<2x8x32xf32, #tpu.memory_space<vmem>>, %arg9: memref<2x8x128xf32, #tpu.memory_space<vmem>>) attributes {dimension_semantics = [#tpu.dimension_semantics<parallel>, #tpu.dimension_semantics<arbitrary>], iteration_bounds = array<i64: 1, 2>, scalar_prefetch = 0 : i64, scratch_operands = 0 : i64, tpu.core_type = #tpu.core_type<tc>, window_params = [{transform_indices = @transform_0, window_bounds = array<i64: 2, 8, 32>}, {transform_indices = @transform_1, window_bounds = array<i64: 1, 32, 96>}, {transform_indices = @transform_2, window_bounds = array<i64: 1, 32, 32>}, {transform_indices = @transform_3, window_bounds = array<i64: 1, 32, 64>}, {transform_indices = @transform_4, window_bounds = array<i64: 1, 64, 32>}, {transform_indices = @transform_5, window_bounds = array<i64: 1, 1, 1024>}, {transform_indices = @transform_6, window_bounds = array<i64: 2, 8, 32>}, {transform_indices = @transform_7, window_bounds = array<i64: 2, 8, 128>}]} {
    %c0_i32 = arith.constant 0 : i32
    %0 = arith.cmpi eq, %arg1, %c0_i32 : i32
    %1 = arith.extui %0 : i1 to i32
    %c0_i32_0 = arith.constant 0 : i32
    %2 = arith.cmpi ne, %1, %c0_i32_0 : i32
    scf.if %2 {
      %c0_61 = arith.constant 0 : index
      %c0_62 = arith.constant 0 : index
      %c0_63 = arith.constant 0 : index
      %129 = vector.load %arg2[%c0_61, %c0_62, %c0_63] : memref<2x8x32xf32, #tpu.memory_space<vmem>>, vector<2x8x32xf32>
      %c0_64 = arith.constant 0 : index
      %c0_65 = arith.constant 0 : index
      %c0_66 = arith.constant 0 : index
      %130 = vector.load %arg8[%c0_64, %c0_65, %c0_66] : memref<2x8x32xf32, #tpu.memory_space<vmem>>, vector<2x8x32xf32>
      tpu.vector_store %arg8[%c0_64, %c0_65, %c0_66], %129 {strides = array<i32>} : memref<2x8x32xf32, #tpu.memory_space<vmem>>, vector<2x8x32xf32>,
      %cst_67 = arith.constant 0.000000e+00 : f32
      %131 = vector.broadcast %cst_67 : f32 to vector<2x8x128xf32>
      %c0_68 = arith.constant 0 : index
      %c0_69 = arith.constant 0 : index
      %c0_70 = arith.constant 0 : index
      %132 = vector.load %arg9[%c0_68, %c0_69, %c0_70] : memref<2x8x128xf32, #tpu.memory_space<vmem>>, vector<2x8x128xf32>
      tpu.vector_store %arg9[%c0_68, %c0_69, %c0_70], %131 {strides = array<i32>} : memref<2x8x128xf32, #tpu.memory_space<vmem>>, vector<2x8x128xf32>,
    } else {
    }
    %c0 = arith.constant 0 : index
    %c0_1 = arith.constant 0 : index
    %c0_2 = arith.constant 0 : index
    %3 = vector.load %arg8[%c0, %c0_1, %c0_2] : memref<2x8x32xf32, #tpu.memory_space<vmem>>, vector<2x8x32xf32>
    %4 = vector.shape_cast %3 : vector<2x8x32xf32> to vector<16x32xf32>
    %5 = arith.truncf %4 : vector<16x32xf32> to vector<16x32xbf16>
    %c0_3 = arith.constant 0 : index
    %c0_4 = arith.constant 0 : index
    %c0_5 = arith.constant 0 : index
    %6 = vector.load %arg3[%c0_3, %c0_4, %c0_5] : memref<1x32x96xbf16, #tpu.memory_space<vmem>>, vector<1x32x96xbf16>
    %7 = vector.shape_cast %6 : vector<1x32x96xbf16> to vector<32x96xbf16>
    %cst = arith.constant dense<0.000000e+00> : vector<16x96xf32>
    %8 = tpu.matmul %5, %7, %cst {dimension_numbers = #tpu.dot_dimension_numbers<[1], [0], [0], [1], [0, 0, 1, 1], [], []>} : vector<16x32xbf16>, vector<32x96xbf16>, vector<16x96xf32> -> vector<16x96xf32>
    %c0_6 = arith.constant 0 : index
    %c0_7 = arith.constant 0 : index
    %c0_8 = arith.constant 0 : index
    %9 = vector.load %arg7[%c0_6, %c0_7, %c0_8] : memref<1x1x1024xf32, #tpu.memory_space<vmem>>, vector<1x1x96xf32>
    %10 = vector.shape_cast %9 : vector<1x1x96xf32> to vector<1x96xf32>
    %11 = vector.broadcast %10 : vector<1x96xf32> to vector<16x96xf32>
    %12 = arith.addf %8, %11 : vector<16x96xf32>
    %13 = vector.shape_cast %12 : vector<16x96xf32> to vector<16x12x8xf32>
    %14 = tpu.transpose %13, [1, 0, 2] : vector<16x12x8xf32> -> vector<12x16x8xf32>
    %15 = vector.extract_strided_slice %14 {offsets = [0, 0, 0], sizes = [4, 16, 8], strides = [1, 1, 1]} : vector<12x16x8xf32> to vector<4x16x8xf32>
    %16 = vector.shape_cast %15 : vector<4x16x8xf32> to vector<8x8x8xf32>
    %17 = arith.truncf %16 : vector<8x8x8xf32> to vector<8x8x8xbf16>
    %18 = vector.extract_strided_slice %14 {offsets = [4, 0, 0], sizes = [4, 16, 8], strides = [1, 1, 1]} : vector<12x16x8xf32> to vector<4x16x8xf32>
    %19 = vector.shape_cast %18 : vector<4x16x8xf32> to vector<8x8x8xf32>
    %20 = arith.truncf %19 : vector<8x8x8xf32> to vector<8x8x8xbf16>
    %21 = vector.extract_strided_slice %14 {offsets = [8, 0, 0], sizes = [4, 16, 8], strides = [1, 1, 1]} : vector<12x16x8xf32> to vector<4x16x8xf32>
    %22 = vector.shape_cast %21 : vector<4x16x8xf32> to vector<8x8x8xf32>
    %23 = arith.truncf %22 : vector<8x8x8xf32> to vector<8x8x8xbf16>
    "tpu.trace_start"() <{level = 10 : i32, message = "gqd,gkd->gqk"}> : () -> ()
    %cst_9 = arith.constant dense<0.000000e+00> : vector<8x8x8xf32>
    %24 = tpu.matmul %17, %20, %cst_9 {dimension_numbers = #tpu.dot_dimension_numbers<[2], [2], [1], [1], [0, 0, 0, 1, 1, 1], [0], [0]>} : vector<8x8x8xbf16>, vector<8x8x8xbf16>, vector<8x8x8xf32> -> vector<8x8x8xf32>
    "tpu.trace_stop"() : () -> ()
    %cst_10 = arith.constant dense<0xFF800000> : vector<8x8xf32>
    %25 = vector.multi_reduction <maximumf>, %24, %cst_10 [2] : vector<8x8x8xf32> to vector<8x8xf32>
    %26 = vector.shape_cast %25 : vector<8x8xf32> to vector<8x8x1xf32>
    %27 = vector.broadcast %26 : vector<8x8x1xf32> to vector<8x8x8xf32>
    %28 = arith.subf %24, %27 : vector<8x8x8xf32>
    %29 = math.exp %28 : vector<8x8x8xf32>
    %cst_11 = arith.constant dense<0.000000e+00> : vector<8x8xf32>
    %30 = vector.multi_reduction <add>, %29, %cst_11 [2] : vector<8x8x8xf32> to vector<8x8xf32>
    %31 = vector.shape_cast %30 : vector<8x8xf32> to vector<8x8x1xf32>
    %32 = vector.broadcast %31 : vector<8x8x1xf32> to vector<8x8x8xf32>
    %33 = arith.divf %29, %32 : vector<8x8x8xf32>
    %34 = vector.shape_cast %33 : vector<8x8x8xf32> to vector<4x2x8x8xf32>
    %cst_12 = arith.constant dense<0.000000e+00> : vector<2x8x8xf32>
    %35 = vector.multi_reduction <add>, %34, %cst_12 [0] : vector<4x2x8x8xf32> to vector<2x8x8xf32>
    %cst_13 = arith.constant 4.000000e+00 : f32
    %36 = vector.broadcast %cst_13 : f32 to vector<2x8x8xf32>
    %37 = arith.divf %35, %36 : vector<2x8x8xf32>
    %c0_14 = arith.constant 0 : index
    %c0_15 = arith.constant 0 : index
    %c0_16 = arith.constant 0 : index
    %38 = vector.load %arg9[%c0_14, %c0_15, %c0_16] : memref<2x8x128xf32, #tpu.memory_space<vmem>>, vector<2x8x8xf32>
    %39 = arith.addf %38, %37 : vector<2x8x8xf32>
    %c0_17 = arith.constant 0 : index
    %c0_18 = arith.constant 0 : index
    %c0_19 = arith.constant 0 : index
    %40 = vector.load %arg9[%c0_17, %c0_18, %c0_19] : memref<2x8x128xf32, #tpu.memory_space<vmem>>, vector<2x8x8xf32>
    tpu.vector_store %arg9[%c0_17, %c0_18, %c0_19], %39 {strides = array<i32>} : memref<2x8x128xf32, #tpu.memory_space<vmem>>, vector<2x8x8xf32>,
    %41 = arith.truncf %33 : vector<8x8x8xf32> to vector<8x8x8xbf16>
    "tpu.trace_start"() <{level = 10 : i32, message = "gqk,gkd->gqd"}> : () -> ()
    %cst_20 = arith.constant dense<0.000000e+00> : vector<8x8x8xf32>
    %42 = tpu.matmul %41, %23, %cst_20 {dimension_numbers = #tpu.dot_dimension_numbers<[2], [1], [1], [2], [0, 0, 0, 1, 1, 2], [0], [0]>} : vector<8x8x8xbf16>, vector<8x8x8xbf16>, vector<8x8x8xf32> -> vector<8x8x8xf32>
    "tpu.trace_stop"() : () -> ()
    %43 = vector.shape_cast %42 : vector<8x8x8xf32> to vector<4x16x8xf32>
    %44 = tpu.transpose %43, [1, 0, 2] : vector<4x16x8xf32> -> vector<16x4x8xf32>
    %45 = vector.shape_cast %44 : vector<16x4x8xf32> to vector<2x8x32xf32>
    %46 = vector.shape_cast %45 : vector<2x8x32xf32> to vector<16x32xf32>
    %47 = arith.truncf %46 : vector<16x32xf32> to vector<16x32xbf16>
    %c0_21 = arith.constant 0 : index
    %c0_22 = arith.constant 0 : index
    %c0_23 = arith.constant 0 : index
    %48 = vector.load %arg4[%c0_21, %c0_22, %c0_23] : memref<1x32x32xbf16, #tpu.memory_space<vmem>>, vector<1x32x32xbf16>
    %49 = vector.shape_cast %48 : vector<1x32x32xbf16> to vector<32x32xbf16>
    %cst_24 = arith.constant dense<0.000000e+00> : vector<16x32xf32>
    %50 = tpu.matmul %47, %49, %cst_24 {dimension_numbers = #tpu.dot_dimension_numbers<[1], [0], [0], [1], [0, 0, 1, 1], [], []>} : vector<16x32xbf16>, vector<32x32xbf16>, vector<16x32xf32> -> vector<16x32xf32>
    %c0_25 = arith.constant 0 : index
    %c0_26 = arith.constant 0 : index
    %c128 = arith.constant 128 : index
    %51 = vector.load %arg7[%c0_25, %c0_26, %c128] : memref<1x1x1024xf32, #tpu.memory_space<vmem>>, vector<1x1x32xf32>
    %52 = vector.shape_cast %51 : vector<1x1x32xf32> to vector<1x32xf32>
    %53 = vector.broadcast %52 : vector<1x32xf32> to vector<16x32xf32>
    %54 = arith.addf %50, %53 : vector<16x32xf32>
    %55 = arith.addf %4, %54 : vector<16x32xf32>
    %c0_27 = arith.constant 0 : index
    %c0_28 = arith.constant 0 : index
    %c512 = arith.constant 512 : index
    %56 = vector.load %arg7[%c0_27, %c0_28, %c512] : memref<1x1x1024xf32, #tpu.memory_space<vmem>>, vector<1x1x32xf32>
    %57 = vector.shape_cast %56 : vector<1x1x32xf32> to vector<1x32xf32>
    %c0_29 = arith.constant 0 : index
    %c0_30 = arith.constant 0 : index
    %c640 = arith.constant 640 : index
    %58 = vector.load %arg7[%c0_29, %c0_30, %c640] : memref<1x1x1024xf32, #tpu.memory_space<vmem>>, vector<1x1x32xf32>
    %59 = vector.shape_cast %58 : vector<1x1x32xf32> to vector<1x32xf32>
    %cst_31 = arith.constant dense<0.000000e+00> : vector<16xf32>
    %60 = vector.multi_reduction <add>, %55, %cst_31 [1] : vector<16x32xf32> to vector<16xf32>
    %61 = vector.shape_cast %60 : vector<16xf32> to vector<16x1xf32>
    %cst_32 = arith.constant 3.200000e+01 : f32
    %62 = vector.broadcast %cst_32 : f32 to vector<16x1xf32>
    %63 = arith.divf %61, %62 : vector<16x1xf32>
    %64 = vector.broadcast %63 : vector<16x1xf32> to vector<16x32xf32>
    %65 = arith.subf %55, %64 : vector<16x32xf32>
    %66 = arith.mulf %65, %65 : vector<16x32xf32>
    %cst_33 = arith.constant dense<0.000000e+00> : vector<16xf32>
    %67 = vector.multi_reduction <add>, %66, %cst_33 [1] : vector<16x32xf32> to vector<16xf32>
    %68 = vector.shape_cast %67 : vector<16xf32> to vector<16x1xf32>
    %cst_34 = arith.constant 3.200000e+01 : f32
    %69 = vector.broadcast %cst_34 : f32 to vector<16x1xf32>
    %70 = arith.divf %68, %69 : vector<16x1xf32>
    %71 = vector.broadcast %63 : vector<16x1xf32> to vector<16x32xf32>
    %72 = arith.subf %55, %71 : vector<16x32xf32>
    %cst_35 = arith.constant 9.99999974E-6 : f32
    %73 = vector.broadcast %cst_35 : f32 to vector<16x1xf32>
    %74 = arith.addf %70, %73 : vector<16x1xf32>
    %75 = math.rsqrt %74 : vector<16x1xf32>
    %76 = vector.broadcast %75 : vector<16x1xf32> to vector<16x32xf32>
    %77 = arith.mulf %72, %76 : vector<16x32xf32>
    %78 = vector.broadcast %57 : vector<1x32xf32> to vector<16x32xf32>
    %79 = arith.mulf %77, %78 : vector<16x32xf32>
    %80 = vector.broadcast %59 : vector<1x32xf32> to vector<16x32xf32>
    %81 = arith.addf %79, %80 : vector<16x32xf32>
    %82 = arith.truncf %81 : vector<16x32xf32> to vector<16x32xbf16>
    %c0_36 = arith.constant 0 : index
    %c0_37 = arith.constant 0 : index
    %c0_38 = arith.constant 0 : index
    %83 = vector.load %arg5[%c0_36, %c0_37, %c0_38] : memref<1x32x64xbf16, #tpu.memory_space<vmem>>, vector<1x32x64xbf16>
    %84 = vector.shape_cast %83 : vector<1x32x64xbf16> to vector<32x64xbf16>
    %cst_39 = arith.constant dense<0.000000e+00> : vector<16x64xf32>
    %85 = tpu.matmul %82, %84, %cst_39 {dimension_numbers = #tpu.dot_dimension_numbers<[1], [0], [0], [1], [0, 0, 1, 1], [], []>} : vector<16x32xbf16>, vector<32x64xbf16>, vector<16x64xf32> -> vector<16x64xf32>
    %c0_40 = arith.constant 0 : index
    %c0_41 = arith.constant 0 : index
    %c256 = arith.constant 256 : index
    %86 = vector.load %arg7[%c0_40, %c0_41, %c256] : memref<1x1x1024xf32, #tpu.memory_space<vmem>>, vector<1x1x64xf32>
    %87 = vector.shape_cast %86 : vector<1x1x64xf32> to vector<1x64xf32>
    %88 = vector.broadcast %87 : vector<1x64xf32> to vector<16x64xf32>
    %89 = arith.addf %85, %88 : vector<16x64xf32>
    %cst_42 = arith.constant 0.000000e+00 : f32
    %90 = vector.broadcast %cst_42 : f32 to vector<16x64xf32>
    %91 = arith.maximumf %89, %90 : vector<16x64xf32>
    %92 = arith.truncf %91 : vector<16x64xf32> to vector<16x64xbf16>
    %c0_43 = arith.constant 0 : index
    %c0_44 = arith.constant 0 : index
    %c0_45 = arith.constant 0 : index
    %93 = vector.load %arg6[%c0_43, %c0_44, %c0_45] : memref<1x64x32xbf16, #tpu.memory_space<vmem>>, vector<1x64x32xbf16>
    %94 = vector.shape_cast %93 : vector<1x64x32xbf16> to vector<64x32xbf16>
    %cst_46 = arith.constant dense<0.000000e+00> : vector<16x32xf32>
    %95 = tpu.matmul %92, %94, %cst_46 {dimension_numbers = #tpu.dot_dimension_numbers<[1], [0], [0], [1], [0, 0, 1, 1], [], []>} : vector<16x64xbf16>, vector<64x32xbf16>, vector<16x32xf32> -> vector<16x32xf32>
    %c0_47 = arith.constant 0 : index
    %c0_48 = arith.constant 0 : index
    %c384 = arith.constant 384 : index
    %96 = vector.load %arg7[%c0_47, %c0_48, %c384] : memref<1x1x1024xf32, #tpu.memory_space<vmem>>, vector<1x1x32xf32>
    %97 = vector.shape_cast %96 : vector<1x1x32xf32> to vector<1x32xf32>
    %98 = vector.broadcast %97 : vector<1x32xf32> to vector<16x32xf32>
    %99 = arith.addf %95, %98 : vector<16x32xf32>
    %100 = arith.addf %81, %99 : vector<16x32xf32>
    %c0_49 = arith.constant 0 : index
    %c0_50 = arith.constant 0 : index
    %c768 = arith.constant 768 : index
    %101 = vector.load %arg7[%c0_49, %c0_50, %c768] : memref<1x1x1024xf32, #tpu.memory_space<vmem>>, vector<1x1x32xf32>
    %102 = vector.shape_cast %101 : vector<1x1x32xf32> to vector<1x32xf32>
    %c0_51 = arith.constant 0 : index
    %c0_52 = arith.constant 0 : index
    %c896 = arith.constant 896 : index
    %103 = vector.load %arg7[%c0_51, %c0_52, %c896] : memref<1x1x1024xf32, #tpu.memory_space<vmem>>, vector<1x1x32xf32>
    %104 = vector.shape_cast %103 : vector<1x1x32xf32> to vector<1x32xf32>
    %cst_53 = arith.constant dense<0.000000e+00> : vector<16xf32>
    %105 = vector.multi_reduction <add>, %100, %cst_53 [1] : vector<16x32xf32> to vector<16xf32>
    %106 = vector.shape_cast %105 : vector<16xf32> to vector<16x1xf32>
    %cst_54 = arith.constant 3.200000e+01 : f32
    %107 = vector.broadcast %cst_54 : f32 to vector<16x1xf32>
    %108 = arith.divf %106, %107 : vector<16x1xf32>
    %109 = vector.broadcast %108 : vector<16x1xf32> to vector<16x32xf32>
    %110 = arith.subf %100, %109 : vector<16x32xf32>
    %111 = arith.mulf %110, %110 : vector<16x32xf32>
    %cst_55 = arith.constant dense<0.000000e+00> : vector<16xf32>
    %112 = vector.multi_reduction <add>, %111, %cst_55 [1] : vector<16x32xf32> to vector<16xf32>
    %113 = vector.shape_cast %112 : vector<16xf32> to vector<16x1xf32>
    %cst_56 = arith.constant 3.200000e+01 : f32
    %114 = vector.broadcast %cst_56 : f32 to vector<16x1xf32>
    %115 = arith.divf %113, %114 : vector<16x1xf32>
    %116 = vector.broadcast %108 : vector<16x1xf32> to vector<16x32xf32>
    %117 = arith.subf %100, %116 : vector<16x32xf32>
    %cst_57 = arith.constant 9.99999974E-6 : f32
    %118 = vector.broadcast %cst_57 : f32 to vector<16x1xf32>
    %119 = arith.addf %115, %118 : vector<16x1xf32>
    %120 = math.rsqrt %119 : vector<16x1xf32>
    %121 = vector.broadcast %120 : vector<16x1xf32> to vector<16x32xf32>
    %122 = arith.mulf %117, %121 : vector<16x32xf32>
    %123 = vector.broadcast %102 : vector<1x32xf32> to vector<16x32xf32>
    %124 = arith.mulf %122, %123 : vector<16x32xf32>
    %125 = vector.broadcast %104 : vector<1x32xf32> to vector<16x32xf32>
    %126 = arith.addf %124, %125 : vector<16x32xf32>
    %127 = vector.shape_cast %126 : vector<16x32xf32> to vector<2x8x32xf32>
    %c0_58 = arith.constant 0 : index
    %c0_59 = arith.constant 0 : index
    %c0_60 = arith.constant 0 : index
    %128 = vector.load %arg8[%c0_58, %c0_59, %c0_60] : memref<2x8x32xf32, #tpu.memory_space<vmem>>, vector<2x8x32xf32>
    tpu.vector_store %arg8[%c0_58, %c0_59, %c0_60], %127 {strides = array<i32>} : memref<2x8x32xf32, #tpu.memory_space<vmem>>, vector<2x8x32xf32>,
    return
  }
  func.func @transform_0(%arg0: i32, %arg1: i32) -> (i32, i32, i32) {
    %c0_i32 = arith.constant 0 : i32
    %c0_i32_0 = arith.constant 0 : i32
    %c0_i32_1 = arith.constant 0 : i32
    return %arg0, %c0_i32, %c0_i32_0 : i32, i32, i32
  }
  func.func @transform_1(%arg0: i32, %arg1: i32) -> (i32, i32, i32) {
    %c0_i32 = arith.constant 0 : i32
    %c0_i32_0 = arith.constant 0 : i32
    %c0_i32_1 = arith.constant 0 : i32
    return %arg1, %c0_i32, %c0_i32_0 : i32, i32, i32
  }
  func.func @transform_2(%arg0: i32, %arg1: i32) -> (i32, i32, i32) {
    %c0_i32 = arith.constant 0 : i32
    %c0_i32_0 = arith.constant 0 : i32
    %c0_i32_1 = arith.constant 0 : i32
    return %arg1, %c0_i32, %c0_i32_0 : i32, i32, i32
  }
  func.func @transform_3(%arg0: i32, %arg1: i32) -> (i32, i32, i32) {
    %c0_i32 = arith.constant 0 : i32
    %c0_i32_0 = arith.constant 0 : i32
    %c0_i32_1 = arith.constant 0 : i32
    return %arg1, %c0_i32, %c0_i32_0 : i32, i32, i32
  }
  func.func @transform_4(%arg0: i32, %arg1: i32) -> (i32, i32, i32) {
    %c0_i32 = arith.constant 0 : i32
    %c0_i32_0 = arith.constant 0 : i32
    %c0_i32_1 = arith.constant 0 : i32
    return %arg1, %c0_i32, %c0_i32_0 : i32, i32, i32
  }
  func.func @transform_5(%arg0: i32, %arg1: i32) -> (i32, i32, i32) {
    %c0_i32 = arith.constant 0 : i32
    %c0_i32_0 = arith.constant 0 : i32
    %c0_i32_1 = arith.constant 0 : i32
    return %arg1, %c0_i32, %c0_i32_0 : i32, i32, i32
  }
  func.func @transform_6(%arg0: i32, %arg1: i32) -> (i32, i32, i32) {
    %c0_i32 = arith.constant 0 : i32
    %c0_i32_0 = arith.constant 0 : i32
    %c0_i32_1 = arith.constant 0 : i32
    return %arg0, %c0_i32, %c0_i32_0 : i32, i32, i32
  }
  func.func @transform_7(%arg0: i32, %arg1: i32) -> (i32, i32, i32) {
    %c0_i32 = arith.constant 0 : i32
    %c0_i32_0 = arith.constant 0 : i32
    %c0_i32_1 = arith.constant 0 : i32
    return %arg0, %c0_i32, %c0_i32_0 : i32, i32, i32
  }
}

</mosaic_0001>

<bundles_post_ra>
// kernel: tpu_custom_call.1
= control target key start
LH: loop header
LB: loop body
LE: loop exit
PB: predicated region body
PF: predicated region fallthrough
CT: control target
= control target key end

     0   :  { %13 = vsyncpa [#allocation3], 0  ;;  %s4337_s0 = inlined_call_operand.hbm [shape: f32[2,8,32], index: 0, kind: input, shape index: {}]   ;;  %s4338_s1 = inlined_call_operand.vmem [shape: bf16[2,32,96], index: 1, kind: input, shape index: {}]   ;;  %s4339_s2 = inlined_call_operand.vmem [shape: bf16[2,32,32], index: 2, kind: input, shape index: {}]   ;;  %s4340_s3 = inlined_call_operand.vmem [shape: bf16[2,32,64], index: 3, kind: input, shape index: {}]   ;;  %s4341_s4 = inlined_call_operand.vmem [shape: bf16[2,64,32], index: 4, kind: input, shape index: {}]   ;;  %s4342_s5 = inlined_call_operand.hbm [shape: f32[2,1,1024], index: 5, kind: input, shape index: {}]   ;;  %s4343_s6 = inlined_call_operand.hbm [shape: f32[2,8,32], index: 6, kind: output, shape index: {0}]   ;;  %s4344_s7 = inlined_call_operand.hbm [shape: f32[2,8,128], index: 7, kind: output, shape index: {1}]  }
   0x1   :  { %14 = vsyncpa [#allocation6], 0 }
   0x2   :  { %16 = vsyncpa [#allocation6 + $0x1], 0 }
   0x3   :  { %17 = vsyncpa [#allocation4], 0 }
   0x4   :  { %18 = vsyncpa [#allocation9], 0  ;;  %s3715_s24 = smov 0   ;;  %s3717_s25 = smov 0  }
   0x5   :  { %s3719_s26 = smov 0   ;;  %s3721_s27 = smov 0  }
   0x6   :  { %s3723_s28 = smov 0   ;;  %s3725_s29 = smov 0  }
   0x7 LB: > { %s4345_s30 = sadd.s32 4294967295, %s3647_s29   ;;  %p186_p0 = scmp.ne.s32.totalorder %s3631_s25, %s3627_s24  ;;  %s3647_s29 = sphi %s3725_s29, %s24_s29   ;;  %s3643_s28 = sphi %s3723_s28, %s4357_s28   ;;  %s3639_s27 = sphi %s3721_s27, %s4356_s27   ;;  %s3635_s26 = sphi %s3719_s26, %s4355_s26   ;;  %s3631_s25 = sphi %s3717_s25, %s4354_s25   ;;  %s3627_s24 = sphi %s3715_s24, %s4353_s24  }
   0x8   : > { %p3747_p1 = scmp.eq.s32.totalorder %s4345_s30, 0  ;;  %p3045_p2 = scmp.ge.s32.totalorder %s3647_s29, 1 }
   0x9   : > { %p249_p3 = scmp.lt.s32.totalorder %s3647_s29, 3  ;;  %s3649_s11 = smov [#allocation2]  }
   0xa   : > { %p3755_p4 = por %p3747_p1, %p186_p0  ;;  %s264_s12 = sshll.u32 %s3649_s11, 4  ;;  %s265_s12 = int_to_ptr.vmem [resolvable:$true] %s264_s12 }
   0xb   : > { %p3759_p5 = pnand %p3045_p2, %p249_p3  ;;  %s33_s14 = sadd.s32 1, %s3643_s28 }
   0xc   : > { %s3494_s15 = scalar_lea.vmem %s265_s12, 256  ;;  %p3502_p12 = scmp.lt.s32.totalorder %s265_s12, %s265_s12 }
   0xd   : > { %p3328_p6 = pneg %p3759_p5  ;;  %p3495_p9 = scmp.ne.s32.totalorder %s265_s12, %s3494_s15 }
   0xe   : > { %p3503_p13 = scmp.lt.s32.totalorder %s3494_s15, %s3494_s15 }
   0xf   : > { %p3767_p7 = pnand %p3328_p6, %p3747_p1 }
  0x10   : > { %p3504_p0 = por %p3503_p13, %p3502_p12 }
  0x11   : > { %p3485_p8 = pneg %p3767_p7 }
  0x13   : > { %p3497_p10 = pnand %p3495_p9, %p3485_p8 }
  0x15   : > { %p3498_p11 = pneg %p3497_p10 }
  0x17   : > { %p3505_p2 = pnand %p3504_p0, %p3498_p11 }
  0x19   : > { %3508 = shalt.err (!%p3505_p2)
}
  0x1a   : > { %s3650_s16 = smov 128   ;;  %s3651_s17 = smov 8  }
  0x1b   : > { %3331 = dma.hbm_to_vmem [thread:$0]  (!%p3767_p7), %s4337_s0, 256, %s265_s12, [#allocation3], %s3650_s16, %s3650_s16, %s3651_s17  }
  0x1c   : > { %p34_p3 = scmp.ge.s32.totalorder %s33_s14, 2  ;;  %s173_s20 = sadd.s32 1, %s3635_s26 }
  0x1d   : > { %p180_p6 = scmp.ne.s32.totalorder %s3635_s26, %s3631_s25  ;;  %p181_p8 = scmp.eq.s32.totalorder %s3647_s29, 0 }
  0x1e   : > { %s4359_s14 = smov (%p34_p3, %s33_s14), 0  ;;  %p3337_p10 = scmp.lt.s32.totalorder %s3647_s29, 2 }
  0x1f   : > { %p182_p9 = por %p181_p8, %p180_p6  ;;  %s170_s21 = ssub.s32 %s3643_s28, %s4359_s14 }
  0x20   : > { %s310_s22 = sand.u32 1, %s3635_s26   ;;  %p171_p11 = scmp.eq.s32.totalorder %s170_s21, 0 }
  0x21   : > { %s3048_s23 = sshll.u32 %s310_s22, 3  ;;  %s3131_s24 = sshll.u32 %s3643_s28, 7 }
  0x22   : > { %s3791_s11 = scalar_select %p171_p11, %s3635_s26, %s173_s20  }
  0x23   : > { %s320_s12 = scalar_lea.hbm %s4342_s5, %s3131_s24  ;;  %s314_s16 = scalar_lea.vmem [#allocation5], %s3048_s23 }
  0x24   : > { %s322_s17 = sshll.u32 %s314_s16, 4  ;;  %p3796_p7 = pnand %p3337_p10, %p182_p9  ;;  %s323_s17 = int_to_ptr.vmem [resolvable:$true] %s322_s17 }
  0x25   : > { %s311_s19 = scalar_lea.sflag [#allocation6], %s310_s22  ;;  %s3522_s21 = scalar_lea.vmem %s323_s17, 128 }
  0x26   : > { %p3511_p12 = pneg %p3796_p7  ;;  %p3523_p13 = scmp.ne.s32.totalorder %s323_s17, %s3522_s21 }
  0x27   : > { %s3652_s20 = smov [#allocation5]  }
  0x28   : > { %p3525_p0 = pnand %p3523_p13, %p3511_p12  ;;  %s3527_s30 = sshll.u32 %s3652_s20, 4  ;;  %s3528_s30 = int_to_ptr.vmem [resolvable:$false] %s3527_s30 }
  0x29   : > { %s3529_s13 = scalar_lea.vmem %s3528_s30, 256  ;;  %p3530_p3 = scmp.lt.s32.totalorder %s323_s17, %s3528_s30 }
  0x2a   : > { %p3526_p2 = pneg %p3525_p0  ;;  %p3531_p6 = scmp.lt.s32.totalorder %s3529_s13, %s3522_s21 }
  0x2c   : > { %p3532_p8 = por %p3531_p6, %p3530_p3 }
  0x2e   : > { %p3533_p9 = pnand %p3532_p8, %p3526_p2 }
  0x30   : > { %3536 = shalt.err (!%p3533_p9)
}
  0x31   : > { %3335 = dma.hbm_to_vmem [thread:$0]  (!%p3796_p7), %s320_s12, 128, %s323_s17, %s311_s19  }
  0x32   : > { %331 = sbr.rel (%p3759_p5) target bundleno = 2587 (0xa1b), region = 44 }
  0x37   : > { %3610 = dma.done.wait (%p3747_p1), [#allocation3], 256  }
  0x38   : > { %3612 = vsyncadd (%p3747_p1), [#allocation3], 4294967040  ;;  %s337_s22 = sand.u32 1, %s3631_s25  }
  0x39   : > { %s3053_s30 = sshll.u32 %s337_s22, 3  ;;  %s338_s23 = scalar_lea.sflag [#allocation6], %s337_s22 }
  0x3a   : > { %s3811_s24 = scalar_lea.vmem [#allocation5], %s3053_s30 }
  0x3b   : > { %3614 = dma.done.wait (%p3755_p4), %s338_s23, 128  }
  0x3c   : > { %3616 = vsyncadd (%p3755_p4), %s338_s23, 4294967168  ;;  %p388_p5 = scmp.lt.s32.totalorder %s3639_s27, 1  ;;  %p3062_p1 = scmp.ne.s32.totalorder %s3639_s27, 0 }
  0x3e   : > { %s389_s10 = scalar_select %p388_p5, %s3639_s27, 1 }
  0x3f   : > { %414 = sbr.rel (%p3062_p1) target bundleno = 71 (0x47), region = 56 }
  0x40   : > { %s3132_s15 = sshll.u32 %s389_s10, 4  ;;  %s3135_s12 = sshll.u32 %s389_s10, 5 }
  0x41   : > { %s392_s17 = scalar_lea.vmem %s4338_s1, %s3132_s15  ;;  %s3825_s21 = scalar_lea.vmem %s4339_s2, %s3132_s15 }
  0x42   : > { %s3830_s9 = scalar_lea.vmem %s4340_s3, %s3132_s15  ;;  %s3835_s23 = scalar_lea.vmem %s4341_s4, %s3135_s12 }
  0x44   : > { %v415_v0 = vld [vmem:[#allocation2] sm:$0xff]  ;;  %vm417_vm0 = vcmask 261120   ;;  %v416_v1 = vld [vmem:[#allocation2 + $0x8] sm:$0xff]  ;;  %v3653_v2 = vmov 0.0  }
  0x45   : > { %418 = vst.msk [vmem:[#allocation7] sm:$0xff] %vm417_vm0, %v415_v0  ;;  %419 = vst.msk [vmem:[#allocation7 + $0x8] sm:$0xff] %vm417_vm0, %v416_v1 }
  0x46   : > { %420 = vst [vmem:[#allocation8] sm:$0xff] %v3653_v2  ;;  %421 = vst [vmem:[#allocation8 + $0x8] sm:$0xff] %v3653_v2 }
  0x47 PF: > { %v3431_v3 = vld [vmem:[%s392_s17 + $0x8] sm:$0xff]   ;;  %v3654_v4 = vmov 0.0   ;;  %v3432_v5 = vld [vmem:[%s392_s17] sm:$0xff]   ;;  %vm3655_vm1 = vmmov 0   ;;  %vm448_vm2 = vcmask 261120   ;;  %s3656_s27 = smov 88   ;;  %v566_v18 = vlaneseq }
  0x48   : > { %3182 = vmatprep.subr.bf16.mxu0 %v3654_v4  ;;  %3190 = vmatprep.subr.bf16.mxu1 %v3654_v4  ;;  %v3063_v9 = vld [vmem:[%s3811_s24] ss:$0 sm:$0xff]  ;;  %s3657_s10 = smov 96   ;;  %s3658_s15 = smov 80   ;;  %v3665_v16 = vmov 1983009808  }
  0x49   : > { %3183 = vmatpush3.bf16.msra.mxu0 %v3431_v3  ;;  %3186 = vmatprep.mubr.msk.bf16.mxu0 %vm3655_vm1, %v3654_v4  ;;  %s3659_s12 = smov 72   ;;  %s3660_s8 = smov 120   ;;  %v564_v17 = vunpack.c.l.s4 %v3665_v16  ;;  %v3666_v21 = vmov 1934713408   ;;  %v567_v24 = vshrl.u32 %v566_v18, 7  ;;  %vm1401_vm3 = vcmask 64512  }
  0x4a   : > { %3184 = vmatprep.subr.bf16.mxu0 %v3654_v4  ;;  %3192 = vmatprep.mubr.msk.bf16.mxu1 %vm3655_vm1, %v3654_v4  ;;  %s3661_s16 = smov 112   ;;  %s3662_s17 = smov 104   ;;  %v628_v22 = vunpack.c.l.s4 %v3666_v21  ;;  %vm1892_vm4 = vcmask 1043456   ;;  %vm2556_vm5 = vcmask 130048   ;;  %vm2559_vm6 = vcmask 195584  }
  0x4b   : > { %s3663_s18 = smov 64   ;;  %s3664_s19 = smov 56   ;;  %v565_v23 = vunpack.c.0.s8 %v564_v17  ;;  %vm2787_vm7 = vcmask 523264  }
  0x4c   : > { %v422_v6 = vld [vmem:[#allocation7] sm:$0xff]  ;;  %v423_v7 = vld [vmem:[#allocation7 + $0x8] sm:$0xff]  ;;  %v629_v27 = vunpack.c.0.s8 %v628_v22  ;;  %s3667_s20 = smov 48   ;;  %s3668_s13 = smov 40  }
  0x4d   : > { %v424_v8 = vpack.c.bf16 %v423_v7, %v422_v6  ;;  %3185 = vmatpush3.bf16.msra.mxu0 %v3432_v5  ;;  %v3872_v28 = vsub.s32 %v565_v23, %v567_v24  ;;  %s3669_s22 = smov 16   ;;  %s3670_s30 = smov 8  }
  0x4e   : > { %3196 = vmatprep.subr.bf16.mxu0 %v3654_v4  ;;  %v3874_v35 = vsub.s32 %v629_v27, %v567_v24 }
  0x50   : > { %3187 = vmatmul.mubr.msk.bf16.vlgmr.msra.gmra.mxu0 %vm448_vm2, %v424_v8 }
  0x51   : > { %3198 = vmatprep.mubr.msk.bf16.mxu0 %vm3655_vm1, %v3654_v4 }
 0x110   : > { %v486_v10 = vpop.f32.mrf.mxu0 }
 0x111   : > { %v3850_v11 = vadd.f32 %v3063_v9, %v486_v10 }
 0x112   : > { %v3188_v12 = vpop.f32.mrf.mxu0 }
 0x113   : > { %519 = vrot.lane.b32.xlu1 %v3850_v11, %s3656_s27  ;;  %513 = vrot.lane.b32.xlu0 %v3850_v11, %s3657_s10 }
 0x114   : > { %v489_v13 = vpop.f32.mrf.mxu0 }
 0x115   : > { %v3854_v14 = vadd.f32 %v3063_v9, %v489_v13 }
 0x116   : > { %v3189_v15 = vpop.f32.mrf.mxu0 }
 0x117   : > { %525 = vrot.lane.b32.xlu0 %v3850_v11, %s3658_s15  ;;  %521 = vrot.lane.b32.xlu1 %v3854_v14, %s3656_s27  ;;  %s3672_s27 = smov [#allocation8]  }
 0x11b   : > { %531 = vrot.lane.b32.xlu0 %v3850_v11, %s3659_s12  ;;  %527 = vrot.lane.b32.xlu1 %v3854_v14, %s3658_s15 }
 0x11f   : > { %495 = vrot.lane.b32.xlu0 %v3850_v11, %s3660_s8  ;;  %533 = vrot.lane.b32.xlu1 %v3854_v14, %s3659_s12 }
 0x123   : > { %497 = vrot.lane.b32.xlu1 %v3854_v14, %s3660_s8  ;;  %515 = vrot.lane.b32.xlu0 %v3854_v14, %s3657_s10  ;;  %s2905_s10 = sshll.u32 %s3672_s27, 4  ;;  %s2906_s10 = int_to_ptr.vmem [resolvable:$true] %s2905_s10 }
 0x124   : > { %s3537_s15 = scalar_lea.vmem %s2906_s10, 256  ;;  %p3544_p12 = scmp.lt.s32.totalorder %s2906_s10, %s2906_s10 }
 0x125   : > { %p3538_p10 = scmp.ne.s32.totalorder %s2906_s10, %s3537_s15  ;;  %p3545_p13 = scmp.lt.s32.totalorder %s3537_s15, %s3537_s15 }
 0x127   : > { %503 = vrot.lane.b32.xlu1 %v3854_v14, %s3661_s16  ;;  %501 = vrot.lane.b32.xlu0 %v3850_v11, %s3661_s16  ;;  %p3546_p0 = por %p3545_p13, %p3544_p12 }
 0x12b   : > { %509 = vrot.lane.b32.xlu1 %v3854_v14, %s3662_s17  ;;  %507 = vrot.lane.b32.xlu0 %v3850_v11, %s3662_s17 }
 0x12f   : > { %537 = vrot.lane.b32.xlu1 %v3850_v11, %s3663_s18  ;;  %539 = vrot.lane.b32.xlu0 %v3854_v14, %s3663_s18 }
 0x133   : > { %543 = vrot.lane.b32.xlu1 %v3850_v11, %s3664_s19 }
 0x137   : > { %545 = vrot.lane.b32.xlu1 %v3854_v14, %s3664_s19 }
 0x185   : > { %v520_v19 = vpop.permute.xlu1 %519  ;;  %v514_v20 = vpop.permute.xlu0 %513 }
 0x189   : > { %v526_v25 = vpop.permute.xlu0 %525  ;;  %v522_v26 = vpop.permute.xlu1 %521 }
 0x18a   : > { %v593_v29 = vcombine.low %v514_v20, %v526_v25  ;;  %v594_v30 = vcombine.high %v514_v20, %v526_v25 }
 0x18c   : > { %v601_v36 = vrot.slane %v593_v29, %v3872_v28  ;;  %v608_v37 = vrot.slane %v594_v30, %v3872_v28 }
 0x18d   : > { %v532_v31 = vpop.permute.xlu0 %531  ;;  %v528_v32 = vpop.permute.xlu1 %527 }
 0x18e   : > { %v609_v33 = vcombine.low %v520_v19, %v532_v31  ;;  %v610_v34 = vcombine.high %v520_v19, %v532_v31 }
 0x190   : > { %v617_v38 = vrot.slane %v609_v33, %v3872_v28  ;;  %v624_v39 = vrot.slane %v610_v34, %v3872_v28 }
 0x191   : > { %v496_v40 = vpop.permute.xlu0 %495  ;;  %v534_v41 = vpop.permute.xlu1 %533 }
 0x192   : > { %v657_v42 = vcombine.low %v601_v36, %v617_v38  ;;  %v658_v43 = vcombine.high %v601_v36, %v617_v38  ;;  %v673_v44 = vcombine.low %v608_v37, %v624_v39  ;;  %v674_v45 = vcombine.high %v608_v37, %v624_v39 }
 0x193   : > { %v813_v46 = vcombine.low %v522_v26, %v534_v41  ;;  %v814_v47 = vcombine.high %v522_v26, %v534_v41 }
 0x194   : > { %v665_v48 = vrot.slane %v657_v42, %v3874_v35  ;;  %v672_v49 = vrot.slane %v658_v43, %v3874_v35  ;;  %v681_v50 = vrot.slane %v673_v44, %v3874_v35  ;;  %v688_v51 = vrot.slane %v674_v45, %v3874_v35 }
 0x195   : > { %v498_v52 = vpop.permute.xlu1 %497  ;;  %v516_v53 = vpop.permute.xlu0 %515  ;;  %v821_v60 = vrot.slane %v813_v46, %v3872_v28  ;;  %v828_v61 = vrot.slane %v814_v47, %v3872_v28 }
 0x196   : > { %v3068_v54 = vcombine.low %v665_v48, %v672_v49  ;;  %v3070_v55 = vcombine.high %v665_v48, %v672_v49  ;;  %v3072_v56 = vcombine.low %v681_v50, %v688_v51  ;;  %v3074_v57 = vcombine.high %v681_v50, %v688_v51 }
 0x197   : > { %v797_v58 = vcombine.low %v516_v53, %v528_v32  ;;  %v798_v59 = vcombine.high %v516_v53, %v528_v32 }
 0x198   : > { %v3887_v62 = vrot.slane %v3068_v54, %v3872_v28  ;;  %v3890_v63 = vrot.slane %v3070_v55, %v3872_v28  ;;  %v3895_v5 = vrot.slane %v3072_v56, %v3872_v28  ;;  %v3898_v6 = vrot.slane %v3074_v57, %v3872_v28 }
 0x199   : > { %v805_v0 = vrot.slane %v797_v58, %v3872_v28  ;;  %v812_v1 = vrot.slane %v798_v59, %v3872_v28  ;;  %v504_v2 = vpop.permute.xlu1 %503  ;;  %v502_v3 = vpop.permute.xlu0 %501 }
 0x19a   : > { %v765_v7 = vcombine.low %v3854_v14, %v504_v2  ;;  %v766_v8 = vcombine.high %v3854_v14, %v504_v2  ;;  %v561_v9 = vcombine.low %v3850_v11, %v502_v3  ;;  %v562_v10 = vcombine.high %v3850_v11, %v502_v3 }
 0x19b   : > { %v861_v12 = vcombine.low %v805_v0, %v821_v60  ;;  %v862_v13 = vcombine.high %v805_v0, %v821_v60  ;;  %v877_v15 = vcombine.low %v812_v1, %v828_v61  ;;  %v878_v16 = vcombine.high %v812_v1, %v828_v61 }
 0x19c   : > { %v773_v17 = vrot.slane %v765_v7, %v3872_v28  ;;  %v780_v18 = vrot.slane %v766_v8, %v3872_v28  ;;  %v569_v19 = vrot.slane %v561_v9, %v3872_v28  ;;  %v576_v20 = vrot.slane %v562_v10, %v3872_v28 }
 0x19d   : > { %v869_v21 = vrot.slane %v861_v12, %v3874_v35  ;;  %v876_v22 = vrot.slane %v862_v13, %v3874_v35  ;;  %v885_v23 = vrot.slane %v877_v15, %v3874_v35  ;;  %v892_v24 = vrot.slane %v878_v16, %v3874_v35  ;;  %v510_v25 = vpop.permute.xlu1 %509  ;;  %v508_v26 = vpop.permute.xlu0 %507 }
 0x19e   : > { %v781_v27 = vcombine.low %v498_v52, %v510_v25  ;;  %v782_v29 = vcombine.high %v498_v52, %v510_v25  ;;  %v577_v30 = vcombine.low %v496_v40, %v508_v26  ;;  %v578_v31 = vcombine.high %v496_v40, %v508_v26 }
 0x19f   : > { %v3076_v32 = vcombine.low %v869_v21, %v876_v22  ;;  %v3078_v33 = vcombine.high %v869_v21, %v876_v22  ;;  %v3080_v34 = vcombine.low %v885_v23, %v892_v24  ;;  %v3082_v36 = vcombine.high %v885_v23, %v892_v24 }
 0x1a0   : > { %v789_v37 = vrot.slane %v781_v27, %v3872_v28  ;;  %v796_v38 = vrot.slane %v782_v29, %v3872_v28  ;;  %v585_v39 = vrot.slane %v577_v30, %v3872_v28  ;;  %v592_v41 = vrot.slane %v578_v31, %v3872_v28 }
 0x1a1   : > { %v3917_v42 = vrot.slane %v3076_v32, %v3872_v28  ;;  %v3920_v43 = vrot.slane %v3078_v33, %v3872_v28  ;;  %v3923_v40 = vrot.slane %v3080_v34, %v3872_v28  ;;  %v3926_v44 = vrot.slane %v3082_v36, %v3872_v28 }
 0x1a2   : > { %v829_v45 = vcombine.low %v773_v17, %v789_v37  ;;  %v830_v46 = vcombine.high %v773_v17, %v789_v37  ;;  %v845_v47 = vcombine.low %v780_v18, %v796_v38  ;;  %v846_v48 = vcombine.high %v780_v18, %v796_v38 }
 0x1a3   : > { %v625_v49 = vcombine.low %v569_v19, %v585_v39  ;;  %v626_v50 = vcombine.high %v569_v19, %v585_v39  ;;  %v641_v51 = vcombine.low %v576_v20, %v592_v41  ;;  %v642_v52 = vcombine.high %v576_v20, %v592_v41 }
 0x1a4   : > { %v837_v53 = vrot.slane %v829_v45, %v3874_v35  ;;  %v844_v54 = vrot.slane %v830_v46, %v3874_v35  ;;  %v853_v55 = vrot.slane %v845_v47, %v3874_v35  ;;  %v860_v56 = vrot.slane %v846_v48, %v3874_v35 }
 0x1a5   : > { %v633_v57 = vrot.slane %v625_v49, %v3874_v35  ;;  %v640_v58 = vrot.slane %v626_v50, %v3874_v35  ;;  %v649_v59 = vrot.slane %v641_v51, %v3874_v35  ;;  %v656_v60 = vrot.slane %v642_v52, %v3874_v35 }
 0x1a6   : > { %v3075_v61 = vcombine.low %v837_v53, %v844_v54  ;;  %v3077_v0 = vcombine.high %v837_v53, %v844_v54  ;;  %v3079_v1 = vcombine.low %v853_v55, %v860_v56  ;;  %v3081_v2 = vcombine.high %v853_v55, %v860_v56 }
 0x1a7   : > { %v3067_v3 = vcombine.low %v633_v57, %v640_v58  ;;  %v3069_v7 = vcombine.high %v633_v57, %v640_v58  ;;  %v3071_v8 = vcombine.low %v649_v59, %v656_v60  ;;  %v3073_v9 = vcombine.high %v649_v59, %v656_v60 }
 0x1a8   : > { %v3937_v10 = vrot.slane %v3075_v61, %v3872_v28  ;;  %v3940_v12 = vrot.slane %v3077_v0, %v3872_v28  ;;  %v3943_v13 = vrot.slane %v3079_v1, %v3872_v28  ;;  %v3946_v15 = vrot.slane %v3081_v2, %v3872_v28 }
 0x1a9   : > { %v3949_v16 = vrot.slane %v3067_v3, %v3872_v28  ;;  %v3952_v17 = vrot.slane %v3069_v7, %v3872_v28  ;;  %v3955_v18 = vrot.slane %v3071_v8, %v3872_v28  ;;  %v3958_v19 = vrot.slane %v3073_v9, %v3872_v28 }
 0x1aa   : > { %v1169_v20 = vcombine.low %v3937_v10, %v3940_v12  ;;  %v1201_v21 = vcombine.low %v3943_v13, %v3946_v15  ;;  %v1049_v22 = vcombine.low %v3887_v62, %v3890_v63  ;;  %v1081_v23 = vcombine.low %v3895_v5, %v3898_v6 }
 0x1ab   : > { %v1185_v24 = vcombine.low %v3917_v42, %v3920_v43  ;;  %v1217_v25 = vcombine.low %v3923_v40, %v3926_v44  ;;  %v1033_v26 = vcombine.low %v3949_v16, %v3952_v17  ;;  %v1065_v27 = vcombine.low %v3955_v18, %v3958_v19 }
 0x1ac   : > { %v1057_v29 = vrot.slane %v1049_v22, %v3874_v35  ;;  %v1089_v30 = vrot.slane %v1081_v23, %v3874_v35  ;;  %v1177_v33 = vrot.slane %v1169_v20, %v3874_v35  ;;  %v1209_v34 = vrot.slane %v1201_v21, %v3874_v35 }
 0x1ad   : > { %v1193_v31 = vrot.slane %v1185_v24, %v3874_v35  ;;  %v1225_v32 = vrot.slane %v1217_v25, %v3874_v35  ;;  %v1041_v37 = vrot.slane %v1033_v26, %v3874_v35  ;;  %v1073_v38 = vrot.slane %v1065_v27, %v3874_v35 }
 0x1ae   : > { %v1101_v36 = vcombine.low %v1057_v29, %v1089_v30  ;;  %v1233_v46 = vcombine.low %v1177_v33, %v1209_v34  ;;  %v1102_v47 = vcombine.high %v1057_v29, %v1089_v30  ;;  %v1050_v50 = vcombine.high %v3887_v62, %v3890_v63 }
 0x1af   : > { %v1237_v39 = vcombine.low %v1193_v31, %v1225_v32  ;;  %v1097_v49 = vcombine.low %v1041_v37, %v1073_v38  ;;  %v1082_v51 = vcombine.high %v3895_v5, %v3898_v6  ;;  %v1238_v53 = vcombine.high %v1193_v31, %v1225_v32 }
 0x1b0   : > { %v1385_v41 = vpack.c.bf16 %v1101_v36, %v1101_v36  ;;  %v1186_v54 = vcombine.high %v3917_v42, %v3920_v43  ;;  %v1218_v55 = vcombine.high %v3923_v40, %v3926_v44  ;;  %v1387_v62 = vpack.c.bf16 %v1102_v47, %v1102_v47 }
 0x1b1   : > { %v1386_v45 = vpack.c.bf16 %v1237_v39, %v1237_v39  ;;  %v1377_v56 = vpack.c.bf16 %v1097_v49, %v1097_v49  ;;  %v1064_v63 = vrot.slane %v1050_v50, %v3874_v35  ;;  %v1096_v5 = vrot.slane %v1082_v51, %v3874_v35 }
 0x1b2   : > { %v1406_v48 = vsel %vm1401_vm3, %v1385_v41, 0  ;;  %v1378_v6 = vpack.c.bf16 %v1233_v46, %v1233_v46  ;;  %v1388_v57 = vpack.c.bf16 %v1238_v53, %v1238_v53  ;;  %v1200_v58 = vrot.slane %v1186_v54, %v3874_v35 }
 0x1b3   : > { %3191 = vmatpush3.bf16.xpose.msra.mxu1 %v1406_v48  ;;  %v1452_v52 = vsel %vm1401_vm3, %v1386_v45, 0  ;;  %v1232_v42 = vrot.slane %v1218_v55, %v3874_v35  ;;  %v1498_v43 = vsel %vm1401_vm3, %v1387_v62, 0  ;;  %v1103_v40 = vcombine.low %v1064_v63, %v1096_v5 }
 0x1b4   : > { %3197 = vmatpush3.bf16.xpose.msra.mxu0 %v1452_v52  ;;  %3202 = vmatprep.subr.bf16.mxu1 %v3654_v4  ;;  %v1544_v44 = vsel %vm1401_vm3, %v1388_v57, 0  ;;  %v1034_v60 = vcombine.high %v3949_v16, %v3952_v17  ;;  %v1066_v61 = vcombine.high %v3955_v18, %v3958_v19  ;;  %v1098_v0 = vcombine.high %v1041_v37, %v1073_v38 }
 0x1b5   : > { %3208 = vmatprep.subr.bf16.mxu0 %v3654_v4  ;;  %v1239_v59 = vcombine.low %v1200_v58, %v1232_v42  ;;  %v1170_v1 = vcombine.high %v3937_v10, %v3940_v12  ;;  %v1202_v2 = vcombine.high %v3943_v13, %v3946_v15  ;;  %v1234_v3 = vcombine.high %v1177_v33, %v1209_v34 }
 0x1b6   : > { %v1389_v7 = vpack.c.bf16 %v1103_v40, %v1103_v40  ;;  %v1379_v9 = vpack.c.bf16 %v1098_v0, %v1098_v0  ;;  %v1048_v16 = vrot.slane %v1034_v60, %v3874_v35  ;;  %v1080_v17 = vrot.slane %v1066_v61, %v3874_v35 }
 0x1b7   : > { %v1390_v8 = vpack.c.bf16 %v1239_v59, %v1239_v59  ;;  %v1380_v18 = vpack.c.bf16 %v1234_v3, %v1234_v3  ;;  %v1184_v10 = vrot.slane %v1170_v1, %v3874_v35  ;;  %v1216_v12 = vrot.slane %v1202_v2, %v3874_v35 }
 0x1b8   : > { %v1590_v13 = vsel %vm1401_vm3, %v1389_v7, 0  ;;  %v1104_v15 = vcombine.high %v1064_v63, %v1096_v5  ;;  %v1240_v20 = vcombine.high %v1200_v58, %v1232_v42  ;;  %v1099_v21 = vcombine.low %v1048_v16, %v1080_v17 }
 0x1b9   : > { %v1636_v19 = vsel %vm1401_vm3, %v1390_v8, 0  ;;  %v1235_v22 = vcombine.low %v1184_v10, %v1216_v12  ;;  %v1100_v30 = vcombine.high %v1048_v16, %v1080_v17  ;;  %v1236_v31 = vcombine.high %v1184_v10, %v1216_v12  ;;  %v4071_v12 = vpop.permute.xlu0 %539 }
 0x1ba   : > { %3193 = vmatmul.mubr.msk.bf16.vlgmr.msra.gmra.mxu1 %vm1401_vm3, %v1377_v56  ;;  %v1391_v23 = vpack.c.bf16 %v1104_v15, %v1104_v15  ;;  %v1392_v24 = vpack.c.bf16 %v1240_v20, %v1240_v20  ;;  %v1381_v25 = vpack.c.bf16 %v1099_v21, %v1099_v21 }
 0x1bb   : > { %3199 = vmatmul.mubr.msk.bf16.vlgmr.msra.gmra.mxu0 %vm1401_vm3, %v1378_v6  ;;  %3203 = vmatpush3.bf16.xpose.msra.mxu1 %v1498_v43  ;;  %v1382_v26 = vpack.c.bf16 %v1235_v22, %v1235_v22  ;;  %v1383_v32 = vpack.c.bf16 %v1100_v30, %v1100_v30  ;;  %v1384_v33 = vpack.c.bf16 %v1236_v31, %v1236_v31 }
 0x1bc   : > { %3209 = vmatpush3.bf16.xpose.msra.mxu0 %v1544_v44  ;;  %3204 = vmatprep.mubr.msk.bf16.mxu1 %vm3655_vm1, %v3654_v4  ;;  %v1682_v27 = vsel %vm1401_vm3, %v1391_v23, 0  ;;  %v1728_v29 = vsel %vm1401_vm3, %v1392_v24, 0 }
 0x1bd   : > { %3210 = vmatprep.mubr.msk.bf16.mxu0 %vm3655_vm1, %v3654_v4  ;;  %3214 = vmatprep.subr.bf16.mxu1 %v3654_v4 }
 0x1be   : > { %3220 = vmatprep.subr.bf16.mxu0 %v3654_v4 }
 0x1c2   : > { %3205 = vmatmul.mubr.msk.bf16.vlgmr.msra.gmra.mxu1 %vm1401_vm3, %v1379_v9 }
 0x1c3   : > { %3211 = vmatmul.mubr.msk.bf16.vlgmr.msra.gmra.mxu0 %vm1401_vm3, %v1380_v18  ;;  %3215 = vmatpush3.bf16.xpose.msra.mxu1 %v1590_v13  ;;  %v4067_v18 = vpop.permute.xlu1 %537 }
 0x1c4   : > { %3221 = vmatpush3.bf16.xpose.msra.mxu0 %v1636_v19  ;;  %3216 = vmatprep.mubr.msk.bf16.mxu1 %vm3655_vm1, %v3654_v4 }
 0x1c5   : > { %3222 = vmatprep.mubr.msk.bf16.mxu0 %vm3655_vm1, %v3654_v4  ;;  %3226 = vmatprep.subr.bf16.mxu1 %v3654_v4 }
 0x1c6   : > { %3232 = vmatprep.subr.bf16.mxu0 %v3654_v4 }
 0x1c7   : > { %v4069_v10 = vpop.permute.xlu1 %543 }
 0x1ca   : > { %3217 = vmatmul.mubr.msk.bf16.vlgmr.msra.gmra.mxu1 %vm1401_vm3, %v1381_v25 }
 0x1cb   : > { %3223 = vmatmul.mubr.msk.bf16.vlgmr.msra.gmra.mxu0 %vm1401_vm3, %v1382_v26  ;;  %3227 = vmatpush3.bf16.xpose.msra.mxu1 %v1682_v27  ;;  %v4073_v13 = vpop.permute.xlu1 %545 }
 0x1cc   : > { %3233 = vmatpush3.bf16.xpose.msra.mxu0 %v1728_v29  ;;  %3228 = vmatprep.mubr.msk.bf16.mxu1 %vm3655_vm1, %v3654_v4 }
 0x1cd   : > { %3234 = vmatprep.mubr.msk.bf16.mxu0 %vm3655_vm1, %v3654_v4  ;;  %3238 = vmatprep.subr.bf16.mxu1 %v3654_v4 }
 0x1ce   : > { %3244 = vmatprep.subr.bf16.mxu0 %v3654_v4 }
 0x1d2   : > { %3229 = vmatmul.mubr.msk.bf16.vlgmr.msra.gmra.mxu1 %vm1401_vm3, %v1383_v32 }
 0x1d3   : > { %3235 = vmatmul.mubr.msk.bf16.vlgmr.msra.gmra.mxu0 %vm1401_vm3, %v1384_v33  ;;  %3240 = vmatprep.mubr.msk.bf16.mxu1 %vm3655_vm1, %v3654_v4 }
 0x1d4   : > { %3246 = vmatprep.mubr.msk.bf16.mxu0 %vm3655_vm1, %v3654_v4 }
 0x27a   : > { %v1442_v34 = vpop.f32.mrf.mxu1 }
 0x27b   : > { %v1488_v36 = vpop.f32.mrf.mxu0  ;;  %v1770_v37 = vsel %vm1401_vm3, %v1442_v34, -inf }
 0x27c   : > { %1771 = vmax.xlane.f32.xlu0 %v1770_v37  ;;  %v3194_v38 = vpop.f32.mrf.mxu1  ;;  %v1773_v39 = vsel %vm1401_vm3, %v1488_v36, -inf }
 0x27d   : > { %1774 = vmax.xlane.f32.xlu1 %v1773_v39  ;;  %v3200_v41 = vpop.f32.mrf.mxu0 }
 0x27e   : > { %v1445_v45 = vpop.f32.mrf.mxu1 }
 0x27f   : > { %v1491_v46 = vpop.f32.mrf.mxu0 }
 0x280   : > { %v3195_v47 = vpop.f32.mrf.mxu1 }
 0x281   : > { %v3201_v48 = vpop.f32.mrf.mxu0 }
 0x282   : > { %v4050_v49 = vpop.f32.mrf.mxu1 }
 0x283   : > { %v4052_v50 = vpop.f32.mrf.mxu0  ;;  %v1776_v51 = vsel %vm1401_vm3, %v4050_v49, -inf }
 0x284   : > { %1777 = vmax.xlane.f32.xlu0 %v1776_v51  ;;  %v3206_v52 = vpop.f32.mrf.mxu1  ;;  %v1779_v56 = vsel %vm1401_vm3, %v4052_v50, -inf }
 0x285   : > { %v3212_v53 = vpop.f32.mrf.mxu0 }
 0x286   : > { %v1537_v54 = vpop.f32.mrf.mxu1 }
 0x287   : > { %v1583_v55 = vpop.f32.mrf.mxu0 }
 0x288   : > { %v3207_v62 = vpop.f32.mrf.mxu1  ;;  %1780 = vmax.xlane.f32.xlu0 %v1779_v56 }
 0x289   : > { %v3213_v63 = vpop.f32.mrf.mxu0 }
 0x28a   : > { %v1626_v5 = vpop.f32.mrf.mxu1 }
 0x28b   : > { %v4058_v6 = vpop.f32.mrf.mxu0  ;;  %v1782_v57 = vsel %vm1401_vm3, %v1626_v5, -inf }
 0x28c   : > { %v3218_v58 = vpop.f32.mrf.mxu1  ;;  %1783 = vmax.xlane.f32.xlu1 %v1782_v57  ;;  %v1785_v42 = vsel %vm1401_vm3, %v4058_v6, -inf }
 0x28d   : > { %1786 = vmax.xlane.f32.xlu0 %v1785_v42  ;;  %v3224_v43 = vpop.f32.mrf.mxu0 }
 0x28e   : > { %v1629_v40 = vpop.f32.mrf.mxu1 }
 0x28f   : > { %v1675_v44 = vpop.f32.mrf.mxu0 }
 0x290   : > { %v3219_v59 = vpop.f32.mrf.mxu1 }
 0x291   : > { %v3225_v60 = vpop.f32.mrf.mxu0 }
 0x292   : > { %v1718_v61 = vpop.f32.mrf.mxu1 }
 0x293   : > { %v1764_v0 = vpop.f32.mrf.mxu0  ;;  %v1788_v1 = vsel %vm1401_vm3, %v1718_v61, -inf }
 0x294   : > { %v3230_v2 = vpop.f32.mrf.mxu1  ;;  %1789 = vmax.xlane.f32.xlu1 %v1788_v1  ;;  %v1791_v3 = vsel %vm1401_vm3, %v1764_v0, -inf }
 0x295   : > { %1792 = vmax.xlane.f32.xlu0 %v1791_v3  ;;  %v3236_v7 = vpop.f32.mrf.mxu0 }
 0x296   : > { %v1721_v8 = vpop.f32.mrf.mxu1 }
 0x297   : > { %v1767_v9 = vpop.f32.mrf.mxu0 }
 0x298   : > { %v3231_v16 = vpop.f32.mrf.mxu1 }
 0x299   : > { %v3237_v17 = vpop.f32.mrf.mxu0 }
 0x2a5   : > { %551 = vrot.lane.b32.xlu1 %v3854_v14, %s3667_s20 }
 0x2ab   : > { %549 = vrot.lane.b32.xlu0 %v3850_v11, %s3667_s20 }
 0x305   : > { %v1772_v15 = vpop.xlane.xlu0 %1771 }
 0x306   : > { %v1794_v19 = vsub.f32 %v1442_v34, %v1772_v15  ;;  %v1775_v20 = vpop.xlane.xlu1 %1774 }
 0x307   : > { %v1795_v21 = vsub.f32 %v1488_v36, %v1775_v20 }
 0x308   : > { %v1802_v22 = vmul.f32 1.442695, %v1794_v19 }
 0x309   : > { %v1804_v23 = vmul.f32 1.442695, %v1795_v21 }
 0x30a   : > { %3441 = vpow2.f32 %v1802_v22 }
 0x30b   : > { %3443 = vpow2.f32 %v1804_v23 }
 0x30d   : > { %v1778_v29 = vpop.xlane.xlu0 %1777 }
 0x30e   : > { %v1796_v33 = vsub.f32 %v4050_v49, %v1778_v29 }
 0x310   : > { %v1806_v38 = vmul.f32 1.442695, %v1796_v33 }
 0x311   : > { %v1781_v30 = vpop.xlane.xlu0 %1780 }
 0x312   : > { %v1797_v32 = vsub.f32 %v4052_v50, %v1781_v30 }
 0x314   : > { %v1808_v36 = vmul.f32 1.442695, %v1797_v32 }
 0x315   : > { %v1784_v31 = vpop.xlane.xlu1 %1783 }
 0x316   : > { %v1798_v39 = vsub.f32 %v1626_v5, %v1784_v31  ;;  %v1787_v41 = vpop.xlane.xlu0 %1786  ;;  %3445 = vpow2.f32 %v1808_v36 }
 0x317   : > { %v4075_v24 = vpop.eup %3441  ;;  %3447 = vpow2.f32 %v1806_v38 }
 0x318   : > { %v4077_v25 = vpop.eup %3443  ;;  %v1818_v26 = vsel %vm1401_vm3, %v4075_v24, 0.0  ;;  %v1810_v46 = vmul.f32 1.442695, %v1798_v39 }
 0x319   : > { %1819 = vadd.xlane.f32.xlu1 %v1818_v26  ;;  %v1821_v27 = vsel %vm1401_vm3, %v4077_v25, 0.0 }
 0x31a   : > { %1822 = vadd.xlane.f32.xlu0 %v1821_v27 }
 0x31d   : > { %v1790_v34 = vpop.xlane.xlu1 %1789 }
 0x31e   : > { %v1800_v37 = vsub.f32 %v1718_v61, %v1790_v34  ;;  %v1793_v47 = vpop.xlane.xlu0 %1792 }
 0x31f   : > { %v1801_v48 = vsub.f32 %v1764_v0, %v1793_v47 }
 0x320   : > { %v1814_v45 = vmul.f32 1.442695, %v1800_v37 }
 0x321   : > { %v1816_v50 = vmul.f32 1.442695, %v1801_v48  ;;  %v552_v58 = vpop.permute.xlu1 %551 }
 0x322   : > { %3449 = vpow2.f32 %v1814_v45  ;;  %v550_v42 = vpop.permute.xlu0 %549  ;;  %v901_v44 = vcombine.low %v4071_v12, %v552_v58  ;;  %v902_v59 = vcombine.high %v4071_v12, %v552_v58 }
 0x323   : > { %3451 = vpow2.f32 %v1810_v46  ;;  %v4088_v49 = vpop.eup %3445  ;;  %v697_v60 = vcombine.low %v4067_v18, %v550_v42  ;;  %v698_v61 = vcombine.high %v4067_v18, %v550_v42 }
 0x324   : > { %v4090_v51 = vpop.eup %3447  ;;  %v1827_v52 = vsel %vm1401_vm3, %v4088_v49, 0.0  ;;  %v909_v7 = vrot.slane %v901_v44, %v3872_v28  ;;  %v916_v8 = vrot.slane %v902_v59, %v3872_v28 }
 0x325   : > { %v1824_v54 = vsel %vm1401_vm3, %v4090_v51, 0.0  ;;  %v705_v17 = vrot.slane %v697_v60, %v3872_v28  ;;  %v712_v15 = vrot.slane %v698_v61, %v3872_v28 }
 0x32a   : > { %557 = vrot.lane.b32.xlu1 %v3854_v14, %s3668_s13  ;;  %v1799_v14 = vsub.f32 %v4058_v6, %v1787_v41 }
 0x32f   : > { %v4094_v53 = vpop.eup %3449 }
 0x330   : > { %555 = vrot.lane.b32.xlu0 %v3850_v11, %s3668_s13  ;;  %v1812_v11 = vmul.f32 1.442695, %v1799_v14  ;;  %v4098_v55 = vpop.eup %3451  ;;  %v1836_v56 = vsel %vm1401_vm3, %v4094_v53, 0.0 }
 0x331   : > { %v1830_v62 = vsel %vm1401_vm3, %v4098_v55, 0.0 }
 0x332   : > { %3453 = vpow2.f32 %v1812_v11 }
 0x333   : > { %3455 = vpow2.f32 %v1816_v50 }
 0x33f   : > { %v4104_v63 = vpop.eup %3453 }
 0x340   : > { %v1833_v5 = vsel %vm1401_vm3, %v4104_v63, 0.0  ;;  %v4108_v6 = vpop.eup %3455 }
 0x341   : > { %v1839_v57 = vsel %vm1401_vm3, %v4108_v6, 0.0 }
 0x34e   : > { %1828 = vadd.xlane.f32.xlu1 %v1827_v52 }
 0x34f   : > { %1825 = vadd.xlane.f32.xlu0 %v1824_v54 }
 0x352   : > { %1837 = vadd.xlane.f32.xlu1 %v1836_v56 }
 0x353   : > { %1831 = vadd.xlane.f32.xlu0 %v1830_v62 }
 0x357   : > { %1834 = vadd.xlane.f32.xlu0 %v1833_v5 }
 0x35b   : > { %1840 = vadd.xlane.f32.xlu0 %v1839_v57 }
 0x3a2   : > { %v1820_v43 = vpop.xlane.xlu1 %1819 }
 0x3a3   : > { %v1823_v40 = vpop.xlane.xlu0 %1822 }
 0x3a4   : > { %3457 = vrcp.f32 %v1823_v40 }
 0x3a5   : > { %3459 = vrcp.f32 %v1820_v43 }
 0x3a6   : > { %v558_v0 = vpop.permute.xlu1 %557 }
 0x3a7   : > { %v917_v1 = vcombine.low %v4073_v13, %v558_v0  ;;  %v918_v2 = vcombine.high %v4073_v13, %v558_v0  ;;  %v556_v3 = vpop.permute.xlu0 %555 }
 0x3a8   : > { %v713_v9 = vcombine.low %v4069_v10, %v556_v3  ;;  %v714_v16 = vcombine.high %v4069_v10, %v556_v3 }
 0x3a9   : > { %v925_v12 = vrot.slane %v917_v1, %v3872_v28  ;;  %v932_v18 = vrot.slane %v918_v2, %v3872_v28 }
 0x3aa   : > { %v721_v13 = vrot.slane %v713_v9, %v3872_v28  ;;  %v728_v19 = vrot.slane %v714_v16, %v3872_v28 }
 0x3ab   : > { %v933_v20 = vcombine.low %v909_v7, %v925_v12  ;;  %v934_v21 = vcombine.high %v909_v7, %v925_v12  ;;  %v949_v22 = vcombine.low %v916_v8, %v932_v18  ;;  %v950_v23 = vcombine.high %v916_v8, %v932_v18 }
 0x3ac   : > { %v729_v26 = vcombine.low %v705_v17, %v721_v13  ;;  %v730_v10 = vcombine.high %v705_v17, %v721_v13  ;;  %v745_v27 = vcombine.low %v712_v15, %v728_v19  ;;  %v746_v29 = vcombine.high %v712_v15, %v728_v19 }
 0x3ad   : > { %v941_v30 = vrot.slane %v933_v20, %v3874_v35  ;;  %v948_v31 = vrot.slane %v934_v21, %v3874_v35  ;;  %v957_v32 = vrot.slane %v949_v22, %v3874_v35  ;;  %v964_v33 = vrot.slane %v950_v23, %v3874_v35 }
 0x3ae   : > { %v737_v34 = vrot.slane %v729_v26, %v3874_v35  ;;  %v744_v36 = vrot.slane %v730_v10, %v3874_v35  ;;  %v753_v37 = vrot.slane %v745_v27, %v3874_v35  ;;  %v760_v38 = vrot.slane %v746_v29, %v3874_v35 }
 0x3af   : > { %v1309_v39 = vcombine.low %v941_v30, %v948_v31  ;;  %v3085_v41 = vcombine.high %v941_v30, %v948_v31  ;;  %v1325_v45 = vcombine.low %v957_v32, %v964_v33  ;;  %v3086_v46 = vcombine.high %v957_v32, %v964_v33 }
 0x3b0   : > { %v1241_v14 = vcombine.low %v737_v34, %v744_v36  ;;  %v3083_v47 = vcombine.high %v737_v34, %v744_v36  ;;  %v1257_v11 = vcombine.low %v753_v37, %v760_v38  ;;  %v3084_v48 = vcombine.high %v753_v37, %v760_v38 }
 0x3b1   : > { %v1316_v50 = vrot.slane %v1309_v39, %v3872_v28  ;;  %v1324_v52 = vrot.slane %v3085_v41, %v3872_v28  ;;  %v1332_v54 = vrot.slane %v1325_v45, %v3872_v28  ;;  %v1340_v56 = vrot.slane %v3086_v46, %v3872_v28  ;;  %v3458_v61 = vpop.eup %3457 }
 0x3b2   : > { %v1248_v62 = vrot.slane %v1241_v14, %v3872_v28  ;;  %v1256_v5 = vrot.slane %v3083_v47, %v3872_v28  ;;  %v1264_v57 = vrot.slane %v1257_v11, %v3872_v28  ;;  %v1272_v58 = vrot.slane %v3084_v48, %v3872_v28  ;;  %v3460_v2 = vpop.eup %3459 }
 0x3b3   : > { %v1341_v42 = vcombine.low %v1316_v50, %v1324_v52  ;;  %v1357_v43 = vcombine.low %v1332_v54, %v1340_v56  ;;  %v4149_v17 = vmul.f32 %v3458_v61, %v4077_v25  ;;  %v1843_v18 = vmul.f32 %v3460_v2, %v4075_v24 }
 0x3b4   : > { %v1273_v40 = vcombine.low %v1248_v62, %v1256_v5  ;;  %v1289_v44 = vcombine.low %v1264_v57, %v1272_v58  ;;  %v1342_v10 = vcombine.high %v1316_v50, %v1324_v52  ;;  %v1358_v27 = vcombine.high %v1332_v54, %v1340_v56 }
 0x3b5   : > { %v1349_v59 = vrot.slane %v1341_v42, %v3874_v35  ;;  %v1365_v60 = vrot.slane %v1357_v43, %v3874_v35  ;;  %v1882_v21 = vpack.c.bf16 %v4149_v17, %v4149_v17  ;;  %v1881_v22 = vpack.c.bf16 %v1843_v18, %v1843_v18 }
 0x3b6   : > { %v1281_v0 = vrot.slane %v1273_v40, %v3874_v35  ;;  %v1297_v1 = vrot.slane %v1289_v44, %v3874_v35  ;;  %v1274_v30 = vcombine.high %v1248_v62, %v1256_v5  ;;  %v1290_v31 = vcombine.high %v1264_v57, %v1272_v58 }
 0x3b7   : > { %v1373_v3 = vcombine.low %v1349_v59, %v1365_v60  ;;  %v1374_v7 = vcombine.high %v1349_v59, %v1365_v60  ;;  %v1356_v33 = vrot.slane %v1342_v10, %v3874_v35  ;;  %v1372_v34 = vrot.slane %v1358_v27, %v3874_v35 }
 0x3b8   : > { %v1305_v8 = vcombine.low %v1281_v0, %v1297_v1  ;;  %v1306_v9 = vcombine.high %v1281_v0, %v1297_v1  ;;  %v1288_v36 = vrot.slane %v1274_v30, %v3874_v35  ;;  %v1304_v37 = vrot.slane %v1290_v31, %v3874_v35 }
 0x3b9   : > { %v1394_v16 = vpack.c.bf16 %v1373_v3, %v1373_v3  ;;  %v1396_v13 = vpack.c.bf16 %v1374_v7, %v1374_v7  ;;  %v1375_v39 = vcombine.low %v1356_v33, %v1372_v34  ;;  %v1858_v57 = vsel %vm1401_vm3, %v1843_v18, 0.0 }
 0x3ba   : > { %v1393_v12 = vpack.c.bf16 %v1305_v8, %v1305_v8  ;;  %v1395_v20 = vpack.c.bf16 %v1306_v9, %v1306_v9  ;;  %v1307_v41 = vcombine.low %v1288_v36, %v1304_v37  ;;  %v1308_v42 = vcombine.high %v1288_v36, %v1304_v37 }
 0x3bb   : > { %v1940_v15 = vsel %vm1892_vm4, %v1394_v16, 0  ;;  %v2032_v24 = vsel %vm1892_vm4, %v1396_v13, 0  ;;  %v1398_v11 = vpack.c.bf16 %v1375_v39, %v1375_v39  ;;  %v1376_v43 = vcombine.high %v1356_v33, %v1372_v34 }
 0x3bc   : > { %v1894_v19 = vsel %vm1892_vm4, %v1393_v12, 0  ;;  %3245 = vmatpush3.bf16.msra.mxu0 %v1940_v15  ;;  %v1986_v25 = vsel %vm1892_vm4, %v1395_v20, 0  ;;  %v1397_v50 = vpack.c.bf16 %v1307_v41, %v1307_v41  ;;  %v1399_v61 = vpack.c.bf16 %v1308_v42, %v1308_v42  ;;  %v1875_v12 = vld [vmem:[#allocation8] sm:$0xff] }
 0x3bd   : > { %3239 = vmatpush3.bf16.msra.mxu1 %v1894_v19  ;;  %3256 = vmatprep.subr.bf16.mxu0 %v3654_v4  ;;  %v2124_v58 = vsel %vm1892_vm4, %v1398_v11, 0  ;;  %v1400_v1 = vpack.c.bf16 %v1376_v43, %v1376_v43  ;;  %v1865_v7 = vsel %vm1401_vm3, %v4149_v17, 0.0 }
 0x3be   : > { %3250 = vmatprep.subr.bf16.mxu1 %v3654_v4 }
 0x3bf   : > { %3247 = vmatmul.mubr.msk.bf16.vlgmr.msra.gmra.mxu0 %vm1401_vm3, %v1882_v21  ;;  %v2216_v19 = vsel %vm1892_vm4, %v1400_v1, 0 }
 0x3c0   : > { %3241 = vmatmul.mubr.msk.bf16.vlgmr.msra.gmra.mxu1 %vm1401_vm3, %v1881_v22  ;;  %3257 = vmatpush3.bf16.msra.mxu0 %v2032_v24 }
 0x3c1   : > { %3251 = vmatpush3.bf16.msra.mxu1 %v1986_v25  ;;  %3252 = vmatprep.mubr.msk.bf16.mxu1 %vm3655_vm1, %v3654_v4 }
 0x3c2   : > { %3258 = vmatprep.mubr.msk.bf16.mxu0 %vm3655_vm1, %v3654_v4  ;;  %3262 = vmatprep.subr.bf16.mxu1 %v3654_v4 }
 0x3c3   : > { %3268 = vmatprep.subr.bf16.mxu0 %v3654_v4 }
 0x3d7   : > { %v1829_v23 = vpop.xlane.xlu1 %1828 }
 0x3d8   : > { %3461 = vrcp.f32 %v1829_v23  ;;  %v1826_v26 = vpop.xlane.xlu0 %1825 }
 0x3d9   : > { %3463 = vrcp.f32 %v1826_v26 }
 0x3db   : > { %v1838_v29 = vpop.xlane.xlu1 %1837 }
 0x3dc   : > { %3465 = vrcp.f32 %v1838_v29  ;;  %v1832_v32 = vpop.xlane.xlu0 %1831 }
 0x3dd   : > { %3467 = vrcp.f32 %v1832_v32 }
 0x3e0   : > { %v1835_v38 = vpop.xlane.xlu0 %1834 }
 0x3e1   : > { %3469 = vrcp.f32 %v1835_v38 }
 0x3e4   : > { %v1841_v45 = vpop.xlane.xlu0 %1840 }
 0x3e5   : > { %v3462_v46 = vpop.eup %3461  ;;  %3471 = vrcp.f32 %v1841_v45 }
 0x3e6   : > { %v3464_v14 = vpop.eup %3463  ;;  %v1849_v47 = vmul.f32 %v3462_v46, %v4088_v49  ;;  %v2078_v49 = vsel %vm1892_vm4, %v1397_v50, 0 }
 0x3e7   : > { %v1847_v48 = vmul.f32 %v3464_v14, %v4090_v51 }
 0x3e8   : > { %v1884_v52 = vpack.c.bf16 %v1849_v47, %v1849_v47  ;;  %v1866_v0 = vsel %vm1401_vm3, %v1849_v47, 0.0 }
 0x3e9   : > { %v3466_v54 = vpop.eup %3465  ;;  %v1859_v56 = vsel %vm1401_vm3, %v1847_v48, 0.0  ;;  %v1883_v62 = vpack.c.bf16 %v1847_v48, %v1847_v48  ;;  %v1867_v15 = vadd.f32 %v1866_v0, %v1865_v7 }
 0x3ea   : > { %v3468_v5 = vpop.eup %3467  ;;  %3259 = vmatmul.mubr.msk.bf16.vlgmr.msra.gmra.mxu0 %vm1401_vm3, %v1884_v52  ;;  %v1855_v40 = vmul.f32 %v3466_v54, %v4094_v53  ;;  %v1860_v44 = vadd.f32 %v1859_v56, %v1858_v57 }
 0x3eb   : > { %3253 = vmatmul.mubr.msk.bf16.vlgmr.msra.gmra.mxu1 %vm1401_vm3, %v1883_v62  ;;  %3269 = vmatpush3.bf16.msra.mxu0 %v2124_v58  ;;  %v1851_v51 = vmul.f32 %v3468_v5, %v4098_v55 }
 0x3ec   : > { %3263 = vmatpush3.bf16.msra.mxu1 %v2078_v49  ;;  %3264 = vmatprep.mubr.msk.bf16.mxu1 %vm3655_vm1, %v3654_v4  ;;  %v1863_v2 = vsel %vm1401_vm3, %v1855_v40, 0.0  ;;  %v1887_v23 = vpack.c.bf16 %v1855_v40, %v1855_v40 }
 0x3ed   : > { %3270 = vmatprep.mubr.msk.bf16.mxu0 %vm3655_vm1, %v3654_v4  ;;  %3274 = vmatprep.subr.bf16.mxu1 %v3654_v4  ;;  %v1861_v59 = vsel %vm1401_vm3, %v1851_v51, 0.0  ;;  %v1885_v8 = vpack.c.bf16 %v1851_v51, %v1851_v51 }
 0x3ee   : > { %v3470_v60 = vpop.eup %3469  ;;  %3280 = vmatprep.subr.bf16.mxu0 %v3654_v4  ;;  %v1862_v55 = vadd.f32 %v1861_v59, %v1860_v44 }
 0x3ef   : > { %v1853_v53 = vmul.f32 %v3470_v60, %v4104_v63  ;;  %v2170_v63 = vsel %vm1892_vm4, %v1399_v61, 0 }
 0x3f0   : > { %v1864_v3 = vadd.f32 %v1863_v2, %v1862_v55 }
 0x3f1   : > { %v1868_v9 = vsel %vm1401_vm3, %v1853_v53, 0.0  ;;  %v1886_v16 = vpack.c.bf16 %v1853_v53, %v1853_v53 }
 0x3f2   : > { %v3472_v18 = vpop.eup %3471  ;;  %v1873_v13 = vmul.f32 0.25, %v1864_v3  ;;  %v1869_v17 = vadd.f32 %v1868_v9, %v1867_v15 }
 0x3f3   : > { %3265 = vmatmul.mubr.msk.bf16.vlgmr.msra.gmra.mxu1 %vm1401_vm3, %v1885_v8  ;;  %3271 = vmatmul.mubr.msk.bf16.vlgmr.msra.gmra.mxu0 %vm1401_vm3, %v1886_v16  ;;  %v1857_v20 = vmul.f32 %v3472_v18, %v4108_v6  ;;  %v1876_v6 = vld [vmem:[#allocation8 + $0x8] sm:$0xff] }
 0x3f4   : > { %3275 = vmatpush3.bf16.msra.mxu1 %v2170_v63  ;;  %3281 = vmatpush3.bf16.msra.mxu0 %v2216_v19  ;;  %v1877_v21 = vadd.f32 %v1875_v12, %v1873_v13 }
 0x3f5   : > { %3276 = vmatprep.mubr.msk.bf16.mxu1 %vm3655_vm1, %v3654_v4  ;;  %3282 = vmatprep.mubr.msk.bf16.mxu0 %vm3655_vm1, %v3654_v4  ;;  %v1870_v22 = vsel %vm1401_vm3, %v1857_v20, 0.0  ;;  %v1888_v26 = vpack.c.bf16 %v1857_v20, %v1857_v20 }
 0x3f6   : > { %3286 = vmatprep.subr.bf16.mxu1 %v3654_v4  ;;  %3294 = vmatprep.subr.bf16.mxu0 %v3654_v4  ;;  %v1871_v24 = vadd.f32 %v1870_v22, %v1869_v17  ;;  %1879 = vst.msk [vmem:[#allocation8] sm:$0xff] %vm1401_vm3, %v1877_v21 }
 0x3f8   : > { %v1874_v25 = vmul.f32 0.25, %v1871_v24 }
 0x3fa   : > { %v1878_v10 = vadd.f32 %v1876_v6, %v1874_v25 }
 0x3fb   : > { %3277 = vmatmul.mubr.msk.bf16.vlgmr.msra.gmra.mxu1 %vm1401_vm3, %v1887_v23  ;;  %3283 = vmatmul.mubr.msk.bf16.vlgmr.msra.gmra.mxu0 %vm1401_vm3, %v1888_v26 }
 0x3fc   : > { %3290 = vmatprep.mubr.msk.bf16.mxu1 %vm3655_vm1, %v3654_v4  ;;  %3298 = vmatprep.mubr.msk.bf16.mxu0 %vm3655_vm1, %v3654_v4  ;;  %1880 = vst.msk [vmem:[#allocation8 + $0x8] sm:$0xff] %vm1401_vm3, %v1878_v10 }
 0x47f   : > { %v1976_v27 = vpop.f32.mrf.mxu0 }
 0x480   : > { %v1930_v29 = vpop.f32.mrf.mxu1 }
 0x481   : > { %v3248_v30 = vpop.f32.mrf.mxu0 }
 0x482   : > { %v3242_v31 = vpop.f32.mrf.mxu1 }
 0x483   : > { %v1979_v32 = vpop.f32.mrf.mxu0 }
 0x484   : > { %v1933_v33 = vpop.f32.mrf.mxu1 }
 0x485   : > { %v3249_v34 = vpop.f32.mrf.mxu0 }
 0x486   : > { %v3243_v36 = vpop.f32.mrf.mxu1 }
 0x4aa   : > { %v2068_v37 = vpop.f32.mrf.mxu0 }
 0x4ab   : > { %v2022_v38 = vpop.f32.mrf.mxu1 }
 0x4ac   : > { %v3260_v39 = vpop.f32.mrf.mxu0 }
 0x4ad   : > { %v3254_v41 = vpop.f32.mrf.mxu1 }
 0x4ae   : > { %v2071_v45 = vpop.f32.mrf.mxu0 }
 0x4af   : > { %v2025_v46 = vpop.f32.mrf.mxu1 }
 0x4b0   : > { %v3261_v14 = vpop.f32.mrf.mxu0 }
 0x4b1   : > { %v3255_v47 = vpop.f32.mrf.mxu1 }
 0x4b2   : > { %v3433_v47 = vld [vmem:[%s3825_s21 + $0x8] sm:$0xff]  }
 0x4b3   : > { %v2114_v11 = vpop.f32.mrf.mxu1  ;;  %v2160_v48 = vpop.f32.mrf.mxu0  ;;  %3287 = vmatpush3.bf16.msra.mxu1 %v3433_v47 }
 0x4b4   : > { %v2258_v62 = vcombine.low %v1930_v29, %v2114_v11  ;;  %v2259_v5 = vcombine.high %v1930_v29, %v2114_v11  ;;  %v2326_v42 = vcombine.low %v1976_v27, %v2160_v48  ;;  %v2327_v49 = vcombine.high %v1976_v27, %v2160_v48  ;;  %3288 = vmatprep.subr.bf16.mxu1 %v3654_v4 }
 0x4b5   : > { %v3266_v50 = vpop.f32.mrf.mxu1  ;;  %v3272_v52 = vpop.f32.mrf.mxu0 }
 0x4b6   : > { %v2266_v61 = vrot.slane %v2258_v62, %v3872_v28  ;;  %v2273_v55 = vrot.slane %v2259_v5, %v3872_v28  ;;  %v2334_v8 = vrot.slane %v2326_v42, %v3872_v28  ;;  %v2341_v9 = vrot.slane %v2327_v49, %v3872_v28 }
 0x4b7   : > { %v2117_v54 = vpop.f32.mrf.mxu1  ;;  %v2163_v56 = vpop.f32.mrf.mxu0 }
 0x4b9   : > { %v3267_v57 = vpop.f32.mrf.mxu1  ;;  %v3273_v58 = vpop.f32.mrf.mxu0 }
 0x4bb   : > { %v2206_v51 = vpop.f32.mrf.mxu1  ;;  %v2252_v43 = vpop.f32.mrf.mxu0 }
 0x4bc   : > { %v2274_v40 = vcombine.low %v2022_v38, %v2206_v51  ;;  %v2275_v44 = vcombine.high %v2022_v38, %v2206_v51  ;;  %v2342_v59 = vcombine.low %v2068_v37, %v2252_v43  ;;  %v2343_v60 = vcombine.high %v2068_v37, %v2252_v43 }
 0x4bd   : > { %v3278_v0 = vpop.f32.mrf.mxu1  ;;  %v3284_v53 = vpop.f32.mrf.mxu0 }
 0x4be   : > { %v2282_v1 = vrot.slane %v2274_v40, %v3872_v28  ;;  %v2289_v2 = vrot.slane %v2275_v44, %v3872_v28  ;;  %v2350_v3 = vrot.slane %v2342_v59, %v3872_v28  ;;  %v2357_v7 = vrot.slane %v2343_v60, %v3872_v28 }
 0x4bf   : > { %v2209_v16 = vpop.f32.mrf.mxu1  ;;  %v2255_v12 = vpop.f32.mrf.mxu0 }
 0x4c0   : > { %v2290_v18 = vcombine.low %v2266_v61, %v2282_v1  ;;  %v2291_v15 = vcombine.high %v2266_v61, %v2282_v1  ;;  %v2306_v13 = vcombine.low %v2273_v55, %v2289_v2  ;;  %v2307_v63 = vcombine.high %v2273_v55, %v2289_v2  ;;  %v3434_v55 = vld [vmem:[%s3825_s21] sm:$0xff]   ;;  %s3671_s21 = smov 24  }
 0x4c1   : > { %v2358_v19 = vcombine.low %v2334_v8, %v2350_v3  ;;  %v2359_v20 = vcombine.high %v2334_v8, %v2350_v3  ;;  %v2374_v17 = vcombine.low %v2341_v9, %v2357_v7  ;;  %v2375_v21 = vcombine.high %v2341_v9, %v2357_v7  ;;  %v3279_v22 = vpop.f32.mrf.mxu1  ;;  %v3285_v24 = vpop.f32.mrf.mxu0  ;;  %3289 = vmatpush3.bf16.msra.mxu1 %v3434_v55 }
 0x4c2   : > { %v2298_v6 = vrot.slane %v2290_v18, %v3874_v35  ;;  %v2305_v25 = vrot.slane %v2291_v15, %v3874_v35  ;;  %v2314_v23 = vrot.slane %v2306_v13, %v3874_v35  ;;  %v2321_v26 = vrot.slane %v2307_v63, %v3874_v35  ;;  %3302 = vmatprep.subr.bf16.mxu1 %v3654_v4 }
 0x4c3   : > { %v2366_v10 = vrot.slane %v2358_v19, %v3874_v35  ;;  %v2373_v27 = vrot.slane %v2359_v20, %v3874_v35  ;;  %v2382_v29 = vrot.slane %v2374_v17, %v3874_v35  ;;  %v2389_v30 = vrot.slane %v2375_v21, %v3874_v35 }
 0x4c4   : > { %v2394_v31 = vcombine.low %v2298_v6, %v2305_v25  ;;  %v3103_v32 = vcombine.high %v2298_v6, %v2305_v25  ;;  %v2410_v33 = vcombine.low %v2314_v23, %v2321_v26  ;;  %v3104_v34 = vcombine.high %v2314_v23, %v2321_v26 }
 0x4c5   : > { %v2462_v36 = vcombine.low %v2366_v10, %v2373_v27  ;;  %v3105_v37 = vcombine.high %v2366_v10, %v2373_v27  ;;  %v2478_v38 = vcombine.low %v2382_v29, %v2389_v30  ;;  %v3106_v39 = vcombine.high %v2382_v29, %v2389_v30  ;;  %v3107_v29 = vld [vmem:[%s3811_s24 + $0x1] ss:$0 sm:$0xff] }
 0x4c6   : > { %v2401_v41 = vrot.slane %v2394_v31, %v3872_v28  ;;  %v2409_v45 = vrot.slane %v3103_v32, %v3872_v28  ;;  %v2417_v46 = vrot.slane %v2410_v33, %v3872_v28  ;;  %v2425_v14 = vrot.slane %v3104_v34, %v3872_v28  ;;  %v3481_v33 = vld [vmem:[#allocation7] sm:$0xff] }
 0x4c7   : > { %v2469_v11 = vrot.slane %v2462_v36, %v3872_v28  ;;  %v2477_v48 = vrot.slane %v3105_v37, %v3872_v28  ;;  %v2485_v50 = vrot.slane %v2478_v38, %v3872_v28  ;;  %v2493_v52 = vrot.slane %v3106_v39, %v3872_v28 }
 0x4c8   : > { %v2427_v54 = vcombine.high %v2401_v41, %v2409_v45  ;;  %v2443_v56 = vcombine.high %v2417_v46, %v2425_v14  ;;  %v2426_v62 = vcombine.low %v2401_v41, %v2409_v45  ;;  %v2442_v5 = vcombine.low %v2417_v46, %v2425_v14  ;;  %v3482_v41 = vld [vmem:[#allocation7 + $0x8] sm:$0xff] }
 0x4c9   : > { %v2495_v57 = vcombine.high %v2469_v11, %v2477_v48  ;;  %v2511_v58 = vcombine.high %v2485_v50, %v2493_v52  ;;  %v2494_v42 = vcombine.low %v2469_v11, %v2477_v48  ;;  %v2510_v49 = vcombine.low %v2485_v50, %v2493_v52 }
 0x4ca   : > { %v2441_v51 = vrot.slane %v2427_v54, %v3874_v35  ;;  %v2457_v43 = vrot.slane %v2443_v56, %v3874_v35  ;;  %v2434_v40 = vrot.slane %v2426_v62, %v3874_v35  ;;  %v2450_v28 = vrot.slane %v2442_v5, %v3874_v35 }
 0x4cb   : > { %v2509_v44 = vrot.slane %v2495_v57, %v3874_v35  ;;  %v2525_v59 = vrot.slane %v2511_v58, %v3874_v35  ;;  %v2502_v60 = vrot.slane %v2494_v42, %v3874_v35  ;;  %v2518_v61 = vrot.slane %v2510_v49, %v3874_v35  ;;  %v3435_v57 = vld [vmem:[%s3830_s9 + $0x8] sm:$0xff]   ;;  %v3436_v58 = vld [vmem:[%s3830_s9] sm:$0xff]   ;;  %v3437_v42 = vld [vmem:[%s3835_s23 + $0x18] sm:$0xff]   ;;  %s4351_s9 = sadd.s32 4294967295, %s3647_s29  }
 0x4cc   : > { %v2460_v0 = vcombine.low %v2441_v51, %v2457_v43  ;;  %v2458_v53 = vcombine.low %v2434_v40, %v2450_v28  ;;  %v2459_v1 = vcombine.high %v2434_v40, %v2450_v28  ;;  %v2461_v16 = vcombine.high %v2441_v51, %v2457_v43  ;;  %3295 = vmatpush3.bf16.msra.mxu0 %v3435_v57  ;;  %p4283_p4 = scmp.eq.s32.totalorder %s4351_s9, 1 }
 0x4cd   : > { %v2528_v2 = vcombine.low %v2509_v44, %v2525_v59  ;;  %v2527_v3 = vcombine.high %v2502_v60, %v2518_v61  ;;  %v2526_v7 = vcombine.low %v2502_v60, %v2518_v61  ;;  %v2529_v12 = vcombine.high %v2509_v44, %v2525_v59  ;;  %3296 = vmatprep.subr.bf16.mxu0 %v3654_v4  ;;  %v3111_v61 = vld [vmem:[%s3811_s24 + $0x4] ss:$0 sm:$0xff] }
 0x4ce   : > { %p3539_p11 = pnand %p3538_p10, %p4283_p4 }
 0x4cf   : > { %v3421_v8 = vpack.i.bf16 %v2528_v2, %v2460_v0  ;;  %v3416_v9 = vpack.i.bf16 %v2527_v3, %v2459_v1  ;;  %v3426_v35 = vpack.i.bf16 %v2529_v12, %v2461_v16  ;;  %v3112_v1 = vld [vmem:[%s3811_s24 + $0x5] ss:$0 sm:$0xff]  ;;  %v3439_v16 = vld [vmem:[%s3835_s23 + $0x8] sm:$0xff]   ;;  %v3440_v12 = vld [vmem:[%s3835_s23] sm:$0xff]  }
 0x4d0   : > { %3297 = vmatpush3.bf16.msra.mxu0 %v3436_v58  ;;  %p3540_p7 = pneg %p3539_p11 }
 0x4d1   : > { %3422 = vrot.lane.b32.xlu0 %v3421_v8, %s3669_s22  ;;  %3417 = vrot.lane.b32.xlu1 %v3416_v9, %s3670_s30  ;;  %v3438_v9 = vld [vmem:[%s3835_s23 + $0x10] sm:$0xff]  }
 0x4d2   : > { %p3547_p2 = pnand %p3546_p0, %p3540_p7 }
 0x4d5   : > { %3427 = vrot.lane.b32.xlu1 %v3426_v35, %s3671_s21  ;;  %v3113_v35 = vld [vmem:[%s3811_s24 + $0x2] ss:$0 sm:$0xff] }
 0x543   : > { %v3423_v18 = vpop.permute.xlu0 %3422  ;;  %v3418_v15 = vpop.permute.xlu1 %3417 }
 0x544   : > { %v3420_v13 = vunpack.i.h.bf16 %v3418_v15  ;;  %v3419_v63 = vunpack.i.l.bf16 %v3418_v15  ;;  %v3425_v19 = vunpack.i.h.bf16 %v3423_v18  ;;  %v3424_v20 = vunpack.i.l.bf16 %v3423_v18 }
 0x546   : > { %v2554_v17 = vsel %vm1401_vm3, %v2458_v53, %v3419_v63  ;;  %v2555_v21 = vsel %vm1401_vm3, %v2526_v7, %v3420_v13 }
 0x547   : > { %v3428_v22 = vpop.permute.xlu1 %3427  ;;  %v2557_v25 = vsel %vm2556_vm5, %v2554_v17, %v3424_v20  ;;  %v2558_v23 = vsel %vm2556_vm5, %v2555_v21, %v3425_v19 }
 0x548   : > { %v3430_v24 = vunpack.i.h.bf16 %v3428_v22  ;;  %v3429_v6 = vunpack.i.l.bf16 %v3428_v22 }
 0x54a   : > { %v2560_v26 = vsel %vm2559_vm6, %v2557_v25, %v3429_v6  ;;  %v2561_v10 = vsel %vm2559_vm6, %v2558_v23, %v3430_v24  ;;  %v3117_v24 = vld [vmem:[%s3811_s24 + $0x3] ss:$0 sm:$0xff] }
 0x54b   : > { %v2562_v27 = vpack.c.bf16 %v2561_v10, %v2560_v26 }
 0x54d   : > { %3291 = vmatmul.mubr.msk.bf16.vlgmr.msra.gmra.mxu1 %vm448_vm2, %v2562_v27 }
 0x54e   : > { %3310 = vmatprep.mubr.msk.bf16.mxu1 %vm3655_vm1, %v3654_v4  ;;  %3303 = vmatpush3.bf16.msra.mxu1 %v3437_v42 }
 0x54f   : > { %3304 = vmatprep.subr.bf16.mxu1 %v3654_v4 }
 0x552   : > { %3305 = vmatpush3.bf16.msra.mxu1 %v3438_v9 }
 0x553   : > { %3306 = vmatprep.subr.bf16.mxu1 %v3654_v4 }
 0x556   : > { %3307 = vmatpush3.bf16.msra.mxu1 %v3439_v16 }
 0x557   : > { %3308 = vmatprep.subr.bf16.mxu1 %v3654_v4 }
 0x55a   : > { %3309 = vmatpush3.bf16.msra.mxu1 %v3440_v12 }
 0x60d   : > { %v2623_v30 = vpop.f32.mrf.mxu1 }
 0x60e   : > { %v2624_v31 = vadd.f32 %v3107_v29, %v2623_v30 }
 0x60f   : > { %v3292_v32 = vpop.f32.mrf.mxu1 }
 0x610   : > { %v2630_v34 = vadd.f32 %v3481_v33, %v2624_v31 }
 0x611   : > { %v2626_v36 = vpop.f32.mrf.mxu1 }
 0x612   : > { %v2627_v37 = vadd.f32 %v3107_v29, %v2626_v36  ;;  %v2634_v38 = vsel %vm448_vm2, %v2630_v34, 0.0 }
 0x613   : > { %2635 = vadd.xlane.f32.xlu1 %v2634_v38  ;;  %v3293_v39 = vpop.f32.mrf.mxu1 }
 0x614   : > { %v2631_v45 = vadd.f32 %v3482_v41, %v2627_v37 }
 0x616   : > { %v2637_v46 = vsel %vm448_vm2, %v2631_v45, 0.0 }
 0x617   : > { %2638 = vadd.xlane.f32.xlu0 %v2637_v46 }
 0x69c   : > { %v2636_v14 = vpop.xlane.xlu1 %2635 }
 0x69d   : > { %v2641_v47 = vmul.f32 0.03125, %v2636_v14 }
 0x69f   : > { %v2643_v11 = vsub.f32 %v2630_v34, %v2641_v47 }
 0x6a0   : > { %v2639_v48 = vpop.xlane.xlu0 %2638 }
 0x6a1   : > { %v2642_v50 = vmul.f32 0.03125, %v2639_v48  ;;  %v2645_v52 = vmul.f32 %v2643_v11, %v2643_v11 }
 0x6a3   : > { %v2644_v54 = vsub.f32 %v2631_v45, %v2642_v50  ;;  %v2647_v56 = vsel %vm448_vm2, %v2645_v52, 0.0 }
 0x6a4   : > { %2648 = vadd.xlane.f32.xlu0 %v2647_v56 }
 0x6a5   : > { %v2646_v62 = vmul.f32 %v2644_v54, %v2644_v54 }
 0x6a7   : > { %v2650_v5 = vsel %vm448_vm2, %v2646_v62, 0.0 }
 0x6a8   : > { %2651 = vadd.xlane.f32.xlu1 %v2650_v5 }
 0x72d   : > { %v2649_v49 = vpop.xlane.xlu0 %2648 }
 0x72e   : > { %v2653_v51 = vmul.f32 0.03125, %v2649_v49 }
 0x730   : > { %v2655_v43 = vadd.f32 1e-05, %v2653_v51 }
 0x731   : > { %v2652_v40 = vpop.xlane.xlu1 %2651 }
 0x732   : > { %3473 = vrsqrt.f32 %v2655_v43  ;;  %v2654_v28 = vmul.f32 0.03125, %v2652_v40 }
 0x734   : > { %v2656_v44 = vadd.f32 1e-05, %v2654_v28 }
 0x736   : > { %3475 = vrsqrt.f32 %v2656_v44 }
 0x73f   : > { %v3474_v59 = vpop.eup %3473 }
 0x740   : > { %v2659_v60 = vmul.f32 %v3474_v59, %v2643_v11 }
 0x742   : > { %v2667_v53 = vmul.f32 %v3111_v61, %v2659_v60 }
 0x743   : > { %v3476_v55 = vpop.eup %3475 }
 0x744   : > { %v2660_v0 = vmul.f32 %v3476_v55, %v2644_v54  ;;  %v2675_v3 = vadd.f32 %v3112_v1, %v2667_v53 }
 0x746   : > { %v2668_v2 = vmul.f32 %v3111_v61, %v2660_v0 }
 0x748   : > { %v2676_v7 = vadd.f32 %v3112_v1, %v2668_v2 }
 0x74a   : > { %v2677_v8 = vpack.c.bf16 %v2676_v7, %v2675_v3 }
 0x74c   : > { %3299 = vmatmul.mubr.msk.bf16.vlgmr.msra.gmra.mxu0 %vm448_vm2, %v2677_v8 }
 0x80c   : > { %v2738_v18 = vpop.f32.mrf.mxu0 }
 0x80d   : > { %v2739_v13 = vadd.f32 %v3113_v35, %v2738_v18 }
 0x80e   : > { %v3300_v15 = vpop.f32.mrf.mxu0 }
 0x80f   : > { %v2745_v17 = vmax.f32 %v2739_v13, 0.0 }
 0x810   : > { %v2741_v63 = vpop.f32.mrf.mxu0 }
 0x811   : > { %v2742_v19 = vadd.f32 %v3113_v35, %v2741_v63 }
 0x812   : > { %v3301_v20 = vpop.f32.mrf.mxu0 }
 0x813   : > { %v2746_v21 = vmax.f32 %v2742_v19, 0.0 }
 0x815   : > { %v2747_v22 = vpack.c.bf16 %v2746_v21, %v2745_v17 }
 0x817   : > { %3311 = vmatmul.mubr.msk.bf16.vlgmr.msra.gmra.mxu1 %vm2787_vm7, %v2747_v22 }
 0x8d7   : > { %v2825_v6 = vpop.f32.mrf.mxu1 }
 0x8d8   : > { %v2826_v25 = vadd.f32 %v3117_v24, %v2825_v6 }
 0x8d9   : > { %v3312_v23 = vpop.f32.mrf.mxu1 }
 0x8da   : > { %v2832_v26 = vadd.f32 %v2826_v25, %v2675_v3 }
 0x8db   : > { %v2828_v10 = vpop.f32.mrf.mxu1 }
 0x8dc   : > { %v2829_v4 = vadd.f32 %v3117_v24, %v2828_v10  ;;  %v2836_v27 = vsel %vm448_vm2, %v2832_v26, 0.0 }
 0x8dd   : > { %2837 = vadd.xlane.f32.xlu0 %v2836_v27  ;;  %v3313_v29 = vpop.f32.mrf.mxu1 }
 0x8de   : > { %v2833_v30 = vadd.f32 %v2829_v4, %v2676_v7 }
 0x8e0   : > { %v2839_v31 = vsel %vm448_vm2, %v2833_v30, 0.0 }
 0x8e1   : > { %2840 = vadd.xlane.f32.xlu1 %v2839_v31 }
 0x966   : > { %v2838_v32 = vpop.xlane.xlu0 %2837 }
 0x967   : > { %v2842_v33 = vmul.f32 0.03125, %v2838_v32 }
 0x969   : > { %v2844_v34 = vsub.f32 %v2832_v26, %v2842_v33 }
 0x96a   : > { %v2841_v36 = vpop.xlane.xlu1 %2840 }
 0x96b   : > { %v2843_v37 = vmul.f32 0.03125, %v2841_v36  ;;  %v2846_v38 = vmul.f32 %v2844_v34, %v2844_v34 }
 0x96d   : > { %v2845_v39 = vsub.f32 %v2833_v30, %v2843_v37  ;;  %v2848_v41 = vsel %vm448_vm2, %v2846_v38, 0.0 }
 0x96e   : > { %2849 = vadd.xlane.f32.xlu0 %v2848_v41 }
 0x96f   : > { %v2847_v45 = vmul.f32 %v2845_v39, %v2845_v39 }
 0x971   : > { %v2851_v46 = vsel %vm448_vm2, %v2847_v45, 0.0 }
 0x972   : > { %2852 = vadd.xlane.f32.xlu1 %v2851_v46 }
 0x973   : > { %3550 = shalt.err (!%p3547_p2)
}
 0x974   : > { %s3673_s12 = smov 128   ;;  %v3123_v56 = vld [vmem:[%s3811_s24 + $0x6] ss:$0 sm:$0xff]  ;;  %v3124_v5 = vld [vmem:[%s3811_s24 + $0x7] ss:$0 sm:$0xff]  ;;  %s3674_s17 = smov [#allocation7]  }
 0x975   : > { %3323 = dma.vmem_to_hbm [thread:$0]  (%p4283_p4), %s2906_s10, 256, %s4344_s7, [#allocation9], %s3673_s12, %s3673_s12, %s3670_s30  }
 0x976   : > { %s2889_s18 = sshll.u32 %s3674_s17, 4  ;;  %s2890_s18 = int_to_ptr.vmem [resolvable:$true] %s2889_s18 }
 0x977   : > { %s3561_s19 = scalar_lea.vmem %s2890_s18, 256  ;;  %p3568_p9 = scmp.lt.s32.totalorder %s2890_s18, %s2890_s18 }
 0x978   : > { %p3562_p3 = scmp.ne.s32.totalorder %s2890_s18, %s3561_s19  ;;  %p3569_p5 = scmp.lt.s32.totalorder %s3561_s19, %s3561_s19 }
 0x97a   : > { %p3563_p6 = pnand %p3562_p3, %p4283_p4  ;;  %p3570_p1 = por %p3569_p5, %p3568_p9 }
 0x97c   : > { %p3564_p8 = pneg %p3563_p6 }
 0x97e   : > { %p3571_p10 = pnand %p3570_p1, %p3564_p8 }
 0x9f7   : > { %v2850_v14 = vpop.xlane.xlu0 %2849 }
 0x9f8   : > { %v2854_v47 = vmul.f32 0.03125, %v2850_v14 }
 0x9fa   : > { %v2856_v11 = vadd.f32 1e-05, %v2854_v47 }
 0x9fb   : > { %v2853_v48 = vpop.xlane.xlu1 %2852 }
 0x9fc   : > { %3477 = vrsqrt.f32 %v2856_v11  ;;  %v2855_v50 = vmul.f32 0.03125, %v2853_v48 }
 0x9fe   : > { %v2857_v52 = vadd.f32 1e-05, %v2855_v50 }
 0xa00   : > { %3479 = vrsqrt.f32 %v2857_v52 }
 0xa09   : > { %v3478_v54 = vpop.eup %3477 }
 0xa0a   : > { %v2860_v62 = vmul.f32 %v3478_v54, %v2844_v34 }
 0xa0c   : > { %v2868_v57 = vmul.f32 %v3123_v56, %v2860_v62 }
 0xa0d   : > { %v3480_v58 = vpop.eup %3479 }
 0xa0e   : > { %v2861_v42 = vmul.f32 %v3480_v58, %v2845_v39  ;;  %v2876_v49 = vadd.f32 %v3124_v5, %v2868_v57 }
 0xa10   : > { %v2869_v51 = vmul.f32 %v3123_v56, %v2861_v42  ;;  %2878 = vst.msk [vmem:[#allocation7] sm:$0xff] %vm448_vm2, %v2876_v49 }
 0xa12   : > { %v2877_v43 = vadd.f32 %v3124_v5, %v2869_v51 }
 0xa14   : > { %2879 = vst.msk [vmem:[#allocation7 + $0x8] sm:$0xff] %vm448_vm2, %v2877_v43 }
 0xa15   : > { %3574 = shalt.err (!%p3571_p10)
}
 0xa16   : > { %3321 = dma.vmem_to_hbm [thread:$0]  (%p4283_p4), %s2890_s18, 256, %s4343_s6, [#allocation4], %s3673_s12, %s3673_s12, %s3670_s30  }
 0xa17   : > { %3618 = dma.done.wait (%p4283_p4), [#allocation4], 256  }
 0xa18   : > { %3620 = vsyncadd (%p4283_p4), [#allocation4], 4294967040 }
 0xa19   : > { %3622 = dma.done.wait (%p4283_p4), [#allocation9], 256  }
 0xa1a   : > { %3624 = vsyncadd (%p4283_p4), [#allocation9], 4294967040 }
 0xa1b PF: > { %s24_s29 = sadd.s32 1, %s3647_s29   ;;  %s4353_s24 = smov %s3631_s25 }
 0xa1c   : > { %p21_p11 = scmp.ge.s32.totalorder %s24_s29, 4   ;;  %s4354_s25 = smov %s3635_s26 }
 0xa1d   : > { %s4355_s26 = smov %s3791_s11  ;;  %s4356_s27 = smov %s3643_s28 }
 0xa1e   : > { %s4357_s28 = smov %s4359_s14  ;;  %23 = sbr.rel (!%p21_p11) target bundleno = 7 (0x7), region = 113 }
 0xa23   :  { %2925 = vsyncpa [#allocation3], 1 }
 0xa24   :  { %2927 = vsyncpa [#allocation3 + $0x1], 1 }
 0xa25   :  { %2928 = vsyncpa [#allocation6], 1 }
 0xa26   :  { %2930 = vsyncpa [#allocation6 + $0x1], 1 }
 0xa27   :  { %2931 = vsyncpa [#allocation4], 1 }
 0xa28   :  { %2933 = vsyncpa [#allocation4 + $0x1], 1 }
 0xa29   :  { %2934 = vsyncpa [#allocation9], 1 }

</bundles_post_ra>
